<compile_context>
chip_gen: v5e
topology: v5e:2x2
jax: 0.10.0
libtpu: 0.0.40
codegen_flags: <defaults>
</compile_context>

<pallas_src>
import jax
import jax.numpy as jnp
from jax.experimental import pallas as pl
from jax.experimental.pallas import tpu as pltpu


def _round_up(x, m):
    return ((x + m - 1) // m) * m


def _pad2(a, rows, cols):
    """Zero-pad a 2-D array up to (rows, cols); skipped entirely when already aligned."""
    pr, pc = rows - a.shape[0], cols - a.shape[1]
    if pr == 0 and pc == 0:
        return a
    return jnp.pad(a, ((0, pr), (0, pc)))


def _chip_config():
    """Return (vmem_budget_bytes, feature_align) for the local TPU generation."""
    vmem_bytes = 64 * 1024 * 1024      # conservative default (v7x per-TC VMEM)
    name = ""
    try:
        info = pltpu.get_tpu_info()
        vmem_bytes = int(getattr(info, "vmem_capacity_bytes", vmem_bytes))
        name = str(getattr(info, "chip_version", "") or getattr(info, "name", ""))
    except Exception:
        pass
    budget = int(vmem_bytes * 0.85)    # ~15% headroom for compiler scratch / semaphores
    # v5-generation MXUs are 128-wide; v6e/v7x are 2x256x256 -> 256-aligned tiles there.
    feature_align = 128 if "5" in name.lower() else 256
    return budget, feature_align


def _two_layer_fc_kernel(x_ref, w1_ref, b1_ref, w2_ref, b2_ref, w3_ref, b3_ref, o_ref):
    # fc1 + relu: f32 MXU accumulation, intermediate stored in the weights' dtype (bf16).
    h1 = jnp.dot(x_ref[...], w1_ref[...], preferred_element_type=jnp.float32)
    h1 = jnp.maximum(h1 + b1_ref[...], 0.0).astype(w2_ref.dtype)
    # fc2 + relu
    h2 = jnp.dot(h1, w2_ref[...], preferred_element_type=jnp.float32)
    h2 = jnp.maximum(h2 + b2_ref[...], 0.0).astype(w3_ref.dtype)
    # fc3 (no activation); bias add in f32, then cast once to the output dtype.
    out = jnp.dot(h2, w3_ref[...], preferred_element_type=jnp.float32)
    o_ref[...] = (out + b3_ref[...]).astype(o_ref.dtype)


def prepare_params(w1, b1, w2, b2, w3, b3, *, compute_dtype=jnp.bfloat16,
                   feature_align=None):
    """Pad + cast the weights ONCE (hoisted out of the per-call hot path).

    Weights are (in_features, out_features) (i.e. PyTorch weight.T); biases may be
    (out,) or (1, out). Zero padding preserves semantics: padded K rows contribute 0
    and padded hidden columns get bias 0 -> relu(0) = 0 -> no effect downstream.
    """
    if feature_align is None:
        _, feature_align = _chip_config()
    num_in, hidden = w1.shape
    num_out = w3.shape[1]
    in_p = _round_up(num_in, feature_align)
    hid_p = _round_up(hidden, feature_align)
    out_p = _round_up(num_out, feature_align)

    def prep_w(w, r, c):
        return _pad2(jnp.asarray(w).astype(compute_dtype), r, c)

    def prep_b(b, c):
        b = jnp.asarray(b, jnp.float32).reshape(1, -1)   # bias add stays in f32
        return _pad2(b, 1, c)

    return {
        "weights": (prep_w(w1, in_p, hid_p), prep_b(b1, hid_p),
                    prep_w(w2, hid_p, hid_p), prep_b(b2, hid_p),
                    prep_w(w3, hid_p, out_p), prep_b(b3, out_p)),
        "num_in": num_in,
        "num_out": num_out,
        "padded": (in_p, hid_p, out_p),
        "compute_dtype": compute_dtype,
    }


def two_layer_fc_apply(x, params, *, block_batch=256, out_dtype=None,
                       x_buffer_depth=None):
    """Fused forward pass; `params` must come from prepare_params()."""
    compute_dtype = params["compute_dtype"]
    out_dtype = compute_dtype if out_dtype is None else out_dtype
    in_p, hid_p, out_p = params["padded"]
    w1p, b1p, w2p, b2p, w3p, b3p = params["weights"]
    num_out = params["num_out"]
    batch = x.shape[0]

    vmem_budget, _ = _chip_config()
    cbytes = jnp.dtype(compute_dtype).itemsize
    obytes = jnp.dtype(out_dtype).itemsize

    # bf16 vregs pack (16, 128): keep batch tiles multiples of 16 rows (32 for 8-bit).
    row_align = 16 if cbytes == 2 else (32 if cbytes == 1 else 8)
    tb = min(_round_up(block_batch, row_align), _round_up(batch, row_align))

    # Resident weights/biases are single-buffered (constant index_map); x/out stream.
    weight_bytes = (in_p * hid_p + hid_p * hid_p + hid_p * out_p) * cbytes
    bias_bytes = (2 * hid_p + out_p) * 4
    if weight_bytes + bias_bytes > vmem_budget:
        # TODO(synk): K-tile fc2 (extra "arbitrary" grid axis + f32 accumulator scratch)
        # so hidden_dim sizes whose weights exceed the VMEM budget still work.
        raise NotImplementedError(
            "resident weights exceed the VMEM budget; K-tiled fallback not implemented")

    def est_bytes(tile_rows, x_depth):
        x_bytes = x_depth * tile_rows * in_p * cbytes
        out_bytes = 2 * tile_rows * out_p * obytes
        interm_bytes = 3 * tile_rows * hid_p * 4    # h1/h2 in f32 + bf16 recasts, margin
        return weight_bytes + bias_bytes + x_bytes + out_bytes + interm_bytes

    # Shrink the batch tile (keeping 16-row multiples) until the estimate fits VMEM.
    while est_bytes(tb, 3) > vmem_budget and tb > row_align:
        tb = max(row_align, _round_up(tb // 2, row_align))

    batch_p = _round_up(batch, tb)
    n_steps = batch_p // tb

    # Deepen the x pipeline only when the layer is small enough to be x-DMA-bound.
    if x_buffer_depth is None:
        x_buffer_depth = 3 if (hid_p <= 512 and n_steps >= 3) else 2

    # Cast before padding (half the bytes moved); skip the pad on the aligned path.
    xp = _pad2(x.astype(compute_dtype), batch_p, in_p)

    vmem_limit = int(min(vmem_budget,
                         max(32 * 1024 * 1024,
                             est_bytes(tb, x_buffer_depth) + (8 << 20))))

    def build_specs(use_pipeline_mode):
        def resident(shape):
            if use_pipeline_mode:
                # Constant block index across the grid -> one VMEM buffer is enough.
                return pl.BlockSpec(shape, lambda i: (0, 0),
                                    pipeline_mode=pl.Buffered(1))
            return pl.BlockSpec(shape, lambda i: (0, 0))

        if use_pipeline_mode and x_buffer_depth != 2:
            x_spec = pl.BlockSpec((tb, in_p), lambda i: (i, 0),
                                  pipeline_mode=pl.Buffered(x_buffer_depth))
        else:
            x_spec = pl.BlockSpec((tb, in_p), lambda i: (i, 0))

        in_specs = [
            x_spec,                       # x: streamed per batch tile
            resident((in_p, hid_p)),      # w1 (VMEM-resident across the grid)
            resident((1, hid_p)),         # b1
            resident((hid_p, hid_p)),     # w2
            resident((1, hid_p)),         # b2
            resident((hid_p, out_p)),     # w3
            resident((1, out_p)),         # b3
        ]
        out_specs = pl.BlockSpec((tb, out_p), lambda i: (i, 0))
        return in_specs, out_specs

    def run(use_pipeline_mode):
        in_specs, out_specs = build_specs(use_pipeline_mode)
        return pl.pallas_call(
            _two_layer_fc_kernel,
            out_shape=jax.ShapeDtypeStruct((batch_p, out_p), out_dtype),
            grid=(n_steps,),
            in_specs=in_specs,
            out_specs=out_specs,
            compiler_params=pltpu.CompilerParams(
                dimension_semantics=("parallel",),
                vmem_limit_bytes=vmem_limit,
            ),
        )(xp, w1p, b1p, w2p, b2p, w3p, b3p)

    try:
        out_padded = run(True)
    except Exception:
        # Fallback for JAX versions where BlockSpec(pipeline_mode=...) is unsupported.
        out_padded = run(False)

    return out_padded[:batch, :num_out]


def two_layer_fc(x, w1, b1, w2, b2, w3, b3, **kwargs):
    """Convenience one-shot wrapper. For repeated calls, hoist prepare_params()."""
    prep_kw = {k: kwargs.pop(k) for k in ("compute_dtype", "feature_align")
               if k in kwargs}
    params = prepare_params(w1, b1, w2, b2, w3, b3, **prep_kw)
    return two_layer_fc_apply(x, params, **kwargs)


def _init_linear_params(key, fan_in, fan_out):
    # Deterministic init mimicking PyTorch Linear's default (+/- 1/sqrt(fan_in) uniform).
    kw, kb = jax.random.split(key)
    bound = 1.0 / jnp.sqrt(fan_in)
    w = jax.random.uniform(kw, (fan_in, fan_out), jnp.float32, -bound, bound)
    b = jax.random.uniform(kb, (fan_out,), jnp.float32, -bound, bound)
    return w, b


if __name__ == "__main__":
    # TwoLayerFC(num_in=16, num_out=8, hidden_dim=32), batch of 8.
    batch, num_in, hidden_dim, num_out = 8, 16, 32, 8

    key = jax.random.PRNGKey(0)
    kx, k1, k2, k3 = jax.random.split(key, 4)

    x = jax.random.normal(kx, (batch, num_in), jnp.float32)
    w1, b1 = _init_linear_params(k1, num_in, hidden_dim)
    w2, b2 = _init_linear_params(k2, hidden_dim, hidden_dim)
    w3, b3 = _init_linear_params(k3, hidden_dim, num_out)

    # Hoisted weight prep (runs once); the hot path only touches the activations.
    params = prepare_params(w1, b1, w2, b2, w3, b3)
    out = two_layer_fc_apply(x, params)
    out = jax.block_until_ready(out)
    assert out.shape == (batch, num_out)

    out_f32 = out.astype(jnp.float32)

    # Pure-JAX reference emulating the kernel's bf16-storage / f32-accumulate math.
    cd = params["compute_dtype"]
    h = jnp.dot(x.astype(cd), w1.astype(cd), preferred_element_type=jnp.float32) + b1
    h = jnp.maximum(h, 0.0).astype(cd)
    h = jnp.dot(h, w2.astype(cd), preferred_element_type=jnp.float32) + b2
    h = jnp.maximum(h, 0.0).astype(cd)
    ref_bf16 = jnp.dot(h, w3.astype(cd), preferred_element_type=jnp.float32) + b3
    ref_bf16 = ref_bf16.astype(cd).astype(jnp.float32)
    assert jnp.allclose(out_f32, ref_bf16, atol=2e-2, rtol=2e-2)

    # Sanity vs. the full-f32 PyTorch-equivalent forward (looser tolerance: bf16 storage).
    ref_f32 = jnp.maximum(x @ w1 + b1, 0.0)
    ref_f32 = jnp.maximum(ref_f32 @ w2 + b2, 0.0)
    ref_f32 = ref_f32 @ w3 + b3
    assert jnp.allclose(out_f32, ref_f32, atol=5e-2, rtol=5e-2)

    print("KERNEL_OK")
</pallas_src>

<mosaic_0001>
module attributes {stable_mosaic.version = 11 : i64} {
  func.func @_two_layer_fc_kernel(%arg0: i32, %arg1: memref<16x256xbf16, #tpu.memory_space<vmem>>, %arg2: memref<256x256xbf16, #tpu.memory_space<vmem>>, %arg3: memref<1x256xf32, #tpu.memory_space<vmem>>, %arg4: memref<256x256xbf16, #tpu.memory_space<vmem>>, %arg5: memref<1x256xf32, #tpu.memory_space<vmem>>, %arg6: memref<256x256xbf16, #tpu.memory_space<vmem>>, %arg7: memref<1x256xf32, #tpu.memory_space<vmem>>, %arg8: memref<16x256xbf16, #tpu.memory_space<vmem>>) attributes {dimension_semantics = [#tpu.dimension_semantics<parallel>], iteration_bounds = array<i64: 1>, scalar_prefetch = 0 : i64, scratch_operands = 0 : i64, tpu.core_type = #tpu.core_type<tc>, window_params = [{transform_indices = @transform_0, window_bounds = array<i64: 16, 256>}, {pipeline_mode = #tpu.pipeline_mode<synchronous>, transform_indices = @transform_1, window_bounds = array<i64: 256, 256>}, {pipeline_mode = #tpu.pipeline_mode<synchronous>, transform_indices = @transform_2, window_bounds = array<i64: 1, 256>}, {pipeline_mode = #tpu.pipeline_mode<synchronous>, transform_indices = @transform_3, window_bounds = array<i64: 256, 256>}, {pipeline_mode = #tpu.pipeline_mode<synchronous>, transform_indices = @transform_4, window_bounds = array<i64: 1, 256>}, {pipeline_mode = #tpu.pipeline_mode<synchronous>, transform_indices = @transform_5, window_bounds = array<i64: 256, 256>}, {pipeline_mode = #tpu.pipeline_mode<synchronous>, transform_indices = @transform_6, window_bounds = array<i64: 1, 256>}, {transform_indices = @transform_7, window_bounds = array<i64: 16, 256>}]} {
    %c0 = arith.constant 0 : index
    %c0_0 = arith.constant 0 : index
    %0 = vector.load %arg1[%c0, %c0_0] : memref<16x256xbf16, #tpu.memory_space<vmem>>, vector<16x256xbf16>
    %c0_1 = arith.constant 0 : index
    %c0_2 = arith.constant 0 : index
    %1 = vector.load %arg2[%c0_1, %c0_2] : memref<256x256xbf16, #tpu.memory_space<vmem>>, vector<256x256xbf16>
    %cst = arith.constant dense<0.000000e+00> : vector<16x256xf32>
    %2 = tpu.matmul %0, %1, %cst {dimension_numbers = #tpu.dot_dimension_numbers<[1], [0], [0], [1], [0, 0, 1, 1], [], []>} : vector<16x256xbf16>, vector<256x256xbf16>, vector<16x256xf32> -> vector<16x256xf32>
    %c0_3 = arith.constant 0 : index
    %c0_4 = arith.constant 0 : index
    %3 = vector.load %arg3[%c0_3, %c0_4] : memref<1x256xf32, #tpu.memory_space<vmem>>, vector<1x256xf32>
    %4 = vector.broadcast %3 : vector<1x256xf32> to vector<16x256xf32>
    %5 = arith.addf %2, %4 : vector<16x256xf32>
    %cst_5 = arith.constant 0.000000e+00 : f32
    %6 = vector.broadcast %cst_5 : f32 to vector<16x256xf32>
    %7 = arith.maximumf %5, %6 : vector<16x256xf32>
    %8 = arith.truncf %7 : vector<16x256xf32> to vector<16x256xbf16>
    %c0_6 = arith.constant 0 : index
    %c0_7 = arith.constant 0 : index
    %9 = vector.load %arg4[%c0_6, %c0_7] : memref<256x256xbf16, #tpu.memory_space<vmem>>, vector<256x256xbf16>
    %cst_8 = arith.constant dense<0.000000e+00> : vector<16x256xf32>
    %10 = tpu.matmul %8, %9, %cst_8 {dimension_numbers = #tpu.dot_dimension_numbers<[1], [0], [0], [1], [0, 0, 1, 1], [], []>} : vector<16x256xbf16>, vector<256x256xbf16>, vector<16x256xf32> -> vector<16x256xf32>
    %c0_9 = arith.constant 0 : index
    %c0_10 = arith.constant 0 : index
    %11 = vector.load %arg5[%c0_9, %c0_10] : memref<1x256xf32, #tpu.memory_space<vmem>>, vector<1x256xf32>
    %12 = vector.broadcast %11 : vector<1x256xf32> to vector<16x256xf32>
    %13 = arith.addf %10, %12 : vector<16x256xf32>
    %cst_11 = arith.constant 0.000000e+00 : f32
    %14 = vector.broadcast %cst_11 : f32 to vector<16x256xf32>
    %15 = arith.maximumf %13, %14 : vector<16x256xf32>
    %16 = arith.truncf %15 : vector<16x256xf32> to vector<16x256xbf16>
    %c0_12 = arith.constant 0 : index
    %c0_13 = arith.constant 0 : index
    %17 = vector.load %arg6[%c0_12, %c0_13] : memref<256x256xbf16, #tpu.memory_space<vmem>>, vector<256x256xbf16>
    %cst_14 = arith.constant dense<0.000000e+00> : vector<16x256xf32>
    %18 = tpu.matmul %16, %17, %cst_14 {dimension_numbers = #tpu.dot_dimension_numbers<[1], [0], [0], [1], [0, 0, 1, 1], [], []>} : vector<16x256xbf16>, vector<256x256xbf16>, vector<16x256xf32> -> vector<16x256xf32>
    %c0_15 = arith.constant 0 : index
    %c0_16 = arith.constant 0 : index
    %19 = vector.load %arg7[%c0_15, %c0_16] : memref<1x256xf32, #tpu.memory_space<vmem>>, vector<1x256xf32>
    %20 = vector.broadcast %19 : vector<1x256xf32> to vector<16x256xf32>
    %21 = arith.addf %18, %20 : vector<16x256xf32>
    %22 = arith.truncf %21 : vector<16x256xf32> to vector<16x256xbf16>
    %c0_17 = arith.constant 0 : index
    %c0_18 = arith.constant 0 : index
    %23 = vector.load %arg8[%c0_17, %c0_18] : memref<16x256xbf16, #tpu.memory_space<vmem>>, vector<16x256xbf16>
    tpu.vector_store %arg8[%c0_17, %c0_18], %22 {strides = array<i32>} : memref<16x256xbf16, #tpu.memory_space<vmem>>, vector<16x256xbf16>,
    return
  }
  func.func @transform_0(%arg0: i32) -> (i32, i32) {
    %c0_i32 = arith.constant 0 : i32
    %c0_i32_0 = arith.constant 0 : i32
    return %arg0, %c0_i32 : i32, i32
  }
  func.func @transform_1(%arg0: i32) -> (i32, i32) {
    %c0_i32 = arith.constant 0 : i32
    %c0_i32_0 = arith.constant 0 : i32
    %c0_i32_1 = arith.constant 0 : i32
    return %c0_i32, %c0_i32_0 : i32, i32
  }
  func.func @transform_2(%arg0: i32) -> (i32, i32) {
    %c0_i32 = arith.constant 0 : i32
    %c0_i32_0 = arith.constant 0 : i32
    %c0_i32_1 = arith.constant 0 : i32
    return %c0_i32, %c0_i32_0 : i32, i32
  }
  func.func @transform_3(%arg0: i32) -> (i32, i32) {
    %c0_i32 = arith.constant 0 : i32
    %c0_i32_0 = arith.constant 0 : i32
    %c0_i32_1 = arith.constant 0 : i32
    return %c0_i32, %c0_i32_0 : i32, i32
  }
  func.func @transform_4(%arg0: i32) -> (i32, i32) {
    %c0_i32 = arith.constant 0 : i32
    %c0_i32_0 = arith.constant 0 : i32
    %c0_i32_1 = arith.constant 0 : i32
    return %c0_i32, %c0_i32_0 : i32, i32
  }
  func.func @transform_5(%arg0: i32) -> (i32, i32) {
    %c0_i32 = arith.constant 0 : i32
    %c0_i32_0 = arith.constant 0 : i32
    %c0_i32_1 = arith.constant 0 : i32
    return %c0_i32, %c0_i32_0 : i32, i32
  }
  func.func @transform_6(%arg0: i32) -> (i32, i32) {
    %c0_i32 = arith.constant 0 : i32
    %c0_i32_0 = arith.constant 0 : i32
    %c0_i32_1 = arith.constant 0 : i32
    return %c0_i32, %c0_i32_0 : i32, i32
  }
  func.func @transform_7(%arg0: i32) -> (i32, i32) {
    %c0_i32 = arith.constant 0 : i32
    %c0_i32_0 = arith.constant 0 : i32
    return %arg0, %c0_i32 : i32, i32
  }
}

module attributes {stable_mosaic.version = 11 : i64} {
  func.func @_two_layer_fc_kernel(%arg0: i32, %arg1: memref<16x256xbf16, #tpu.memory_space<vmem>>, %arg2: memref<256x256xbf16, #tpu.memory_space<vmem>>, %arg3: memref<1x256xf32, #tpu.memory_space<vmem>>, %arg4: memref<256x256xbf16, #tpu.memory_space<vmem>>, %arg5: memref<1x256xf32, #tpu.memory_space<vmem>>, %arg6: memref<256x256xbf16, #tpu.memory_space<vmem>>, %arg7: memref<1x256xf32, #tpu.memory_space<vmem>>, %arg8: memref<16x256xbf16, #tpu.memory_space<vmem>>) attributes {dimension_semantics = [#tpu.dimension_semantics<parallel>], iteration_bounds = array<i64: 1>, scalar_prefetch = 0 : i64, scratch_operands = 0 : i64, tpu.core_type = #tpu.core_type<tc>, window_params = [{transform_indices = @transform_0, window_bounds = array<i64: 16, 256>}, {pipeline_mode = #tpu.pipeline_mode<synchronous>, transform_indices = @transform_1, window_bounds = array<i64: 256, 256>}, {pipeline_mode = #tpu.pipeline_mode<synchronous>, transform_indices = @transform_2, window_bounds = array<i64: 1, 256>}, {pipeline_mode = #tpu.pipeline_mode<synchronous>, transform_indices = @transform_3, window_bounds = array<i64: 256, 256>}, {pipeline_mode = #tpu.pipeline_mode<synchronous>, transform_indices = @transform_4, window_bounds = array<i64: 1, 256>}, {pipeline_mode = #tpu.pipeline_mode<synchronous>, transform_indices = @transform_5, window_bounds = array<i64: 256, 256>}, {pipeline_mode = #tpu.pipeline_mode<synchronous>, transform_indices = @transform_6, window_bounds = array<i64: 1, 256>}, {transform_indices = @transform_7, window_bounds = array<i64: 16, 256>}]} {
    %c0 = arith.constant 0 : index
    %c0_0 = arith.constant 0 : index
    %0 = vector.load %arg1[%c0, %c0_0] : memref<16x256xbf16, #tpu.memory_space<vmem>>, vector<16x256xbf16>
    %c0_1 = arith.constant 0 : index
    %c0_2 = arith.constant 0 : index
    %1 = vector.load %arg2[%c0_1, %c0_2] : memref<256x256xbf16, #tpu.memory_space<vmem>>, vector<256x256xbf16>
    %cst = arith.constant dense<0.000000e+00> : vector<16x256xf32>
    %2 = tpu.matmul %0, %1, %cst {dimension_numbers = #tpu.dot_dimension_numbers<[1], [0], [0], [1], [0, 0, 1, 1], [], []>} : vector<16x256xbf16>, vector<256x256xbf16>, vector<16x256xf32> -> vector<16x256xf32>
    %c0_3 = arith.constant 0 : index
    %c0_4 = arith.constant 0 : index
    %3 = vector.load %arg3[%c0_3, %c0_4] : memref<1x256xf32, #tpu.memory_space<vmem>>, vector<1x256xf32>
    %4 = vector.broadcast %3 : vector<1x256xf32> to vector<16x256xf32>
    %5 = arith.addf %2, %4 : vector<16x256xf32>
    %cst_5 = arith.constant 0.000000e+00 : f32
    %6 = vector.broadcast %cst_5 : f32 to vector<16x256xf32>
    %7 = arith.maximumf %5, %6 : vector<16x256xf32>
    %8 = arith.truncf %7 : vector<16x256xf32> to vector<16x256xbf16>
    %c0_6 = arith.constant 0 : index
    %c0_7 = arith.constant 0 : index
    %9 = vector.load %arg4[%c0_6, %c0_7] : memref<256x256xbf16, #tpu.memory_space<vmem>>, vector<256x256xbf16>
    %cst_8 = arith.constant dense<0.000000e+00> : vector<16x256xf32>
    %10 = tpu.matmul %8, %9, %cst_8 {dimension_numbers = #tpu.dot_dimension_numbers<[1], [0], [0], [1], [0, 0, 1, 1], [], []>} : vector<16x256xbf16>, vector<256x256xbf16>, vector<16x256xf32> -> vector<16x256xf32>
    %c0_9 = arith.constant 0 : index
    %c0_10 = arith.constant 0 : index
    %11 = vector.load %arg5[%c0_9, %c0_10] : memref<1x256xf32, #tpu.memory_space<vmem>>, vector<1x256xf32>
    %12 = vector.broadcast %11 : vector<1x256xf32> to vector<16x256xf32>
    %13 = arith.addf %10, %12 : vector<16x256xf32>
    %cst_11 = arith.constant 0.000000e+00 : f32
    %14 = vector.broadcast %cst_11 : f32 to vector<16x256xf32>
    %15 = arith.maximumf %13, %14 : vector<16x256xf32>
    %16 = arith.truncf %15 : vector<16x256xf32> to vector<16x256xbf16>
    %c0_12 = arith.constant 0 : index
    %c0_13 = arith.constant 0 : index
    %17 = vector.load %arg6[%c0_12, %c0_13] : memref<256x256xbf16, #tpu.memory_space<vmem>>, vector<256x256xbf16>
    %cst_14 = arith.constant dense<0.000000e+00> : vector<16x256xf32>
    %18 = tpu.matmul %16, %17, %cst_14 {dimension_numbers = #tpu.dot_dimension_numbers<[1], [0], [0], [1], [0, 0, 1, 1], [], []>} : vector<16x256xbf16>, vector<256x256xbf16>, vector<16x256xf32> -> vector<16x256xf32>
    %c0_15 = arith.constant 0 : index
    %c0_16 = arith.constant 0 : index
    %19 = vector.load %arg7[%c0_15, %c0_16] : memref<1x256xf32, #tpu.memory_space<vmem>>, vector<1x256xf32>
    %20 = vector.broadcast %19 : vector<1x256xf32> to vector<16x256xf32>
    %21 = arith.addf %18, %20 : vector<16x256xf32>
    %22 = arith.truncf %21 : vector<16x256xf32> to vector<16x256xbf16>
    %c0_17 = arith.constant 0 : index
    %c0_18 = arith.constant 0 : index
    %23 = vector.load %arg8[%c0_17, %c0_18] : memref<16x256xbf16, #tpu.memory_space<vmem>>, vector<16x256xbf16>
    tpu.vector_store %arg8[%c0_17, %c0_18], %22 {strides = array<i32>} : memref<16x256xbf16, #tpu.memory_space<vmem>>, vector<16x256xbf16>,
    return
  }
  func.func @transform_0(%arg0: i32) -> (i32, i32) {
    %c0_i32 = arith.constant 0 : i32
    %c0_i32_0 = arith.constant 0 : i32
    return %arg0, %c0_i32 : i32, i32
  }
  func.func @transform_1(%arg0: i32) -> (i32, i32) {
    %c0_i32 = arith.constant 0 : i32
    %c0_i32_0 = arith.constant 0 : i32
    %c0_i32_1 = arith.constant 0 : i32
    return %c0_i32, %c0_i32_0 : i32, i32
  }
  func.func @transform_2(%arg0: i32) -> (i32, i32) {
    %c0_i32 = arith.constant 0 : i32
    %c0_i32_0 = arith.constant 0 : i32
    %c0_i32_1 = arith.constant 0 : i32
    return %c0_i32, %c0_i32_0 : i32, i32
  }
  func.func @transform_3(%arg0: i32) -> (i32, i32) {
    %c0_i32 = arith.constant 0 : i32
    %c0_i32_0 = arith.constant 0 : i32
    %c0_i32_1 = arith.constant 0 : i32
    return %c0_i32, %c0_i32_0 : i32, i32
  }
  func.func @transform_4(%arg0: i32) -> (i32, i32) {
    %c0_i32 = arith.constant 0 : i32
    %c0_i32_0 = arith.constant 0 : i32
    %c0_i32_1 = arith.constant 0 : i32
    return %c0_i32, %c0_i32_0 : i32, i32
  }
  func.func @transform_5(%arg0: i32) -> (i32, i32) {
    %c0_i32 = arith.constant 0 : i32
    %c0_i32_0 = arith.constant 0 : i32
    %c0_i32_1 = arith.constant 0 : i32
    return %c0_i32, %c0_i32_0 : i32, i32
  }
  func.func @transform_6(%arg0: i32) -> (i32, i32) {
    %c0_i32 = arith.constant 0 : i32
    %c0_i32_0 = arith.constant 0 : i32
    %c0_i32_1 = arith.constant 0 : i32
    return %c0_i32, %c0_i32_0 : i32, i32
  }
  func.func @transform_7(%arg0: i32) -> (i32, i32) {
    %c0_i32 = arith.constant 0 : i32
    %c0_i32_0 = arith.constant 0 : i32
    return %arg0, %c0_i32 : i32, i32
  }
}

</mosaic_0001>

<bundles_post_ra>
// kernel: tpu_custom_call.1
= control target key start
LH: loop header
LB: loop body
LE: loop exit
PB: predicated region body
PF: predicated region fallthrough
CT: control target
= control target key end

     0   :  { %12 = vsyncpa [#allocation3], 0  ;;  %s1651_s0 = inlined_call_operand.hbm [shape: bf16[16,256], index: 0, kind: input, shape index: {}]   ;;  %s1652_s1 = inlined_call_operand.hbm [shape: bf16[256,256], index: 1, kind: input, shape index: {}]   ;;  %s1653_s2 = inlined_call_operand.hbm [shape: f32[1,256], index: 2, kind: input, shape index: {}]   ;;  %s1654_s3 = inlined_call_operand.hbm [shape: bf16[256,256], index: 3, kind: input, shape index: {}]   ;;  %s1655_s4 = inlined_call_operand.vmem [shape: f32[1,256], index: 4, kind: input, shape index: {}]   ;;  %s1656_s5 = inlined_call_operand.hbm [shape: bf16[256,256], index: 5, kind: input, shape index: {}]   ;;  %s1657_s6 = inlined_call_operand.vmem [shape: f32[1,256], index: 6, kind: input, shape index: {}]   ;;  %s1658_s7 = inlined_call_operand.hbm [shape: bf16[16,256], index: 7, kind: output, shape index: {}]  }
   0x1   :  { %13 = vsyncpa [#allocation6], 0 }
   0x2   :  { %14 = vsyncpa [#allocation9], 0 }
   0x3   :  { %15 = vsyncpa [#allocation4], 0  ;;  %s33_s26 = sshll.u32 %s1652_s1, 4  ;;  %s1564_s27 = smov [#allocation5]   ;;  %s34_s26 = int_to_ptr.hbm [resolvable:$true] %s33_s26 }
   0x4   :  { %s35_s28 = sshll.u32 %s1564_s27, 4  ;;  %s57_s8 = sshll.u32 %s1654_s3, 4  ;;  %s36_s28 = int_to_ptr.vmem [resolvable:$true] %s35_s28  ;;  %s58_s8 = int_to_ptr.hbm [resolvable:$true] %s57_s8 }
   0x5   :  { %s1565_s9 = smov 128   ;;  %s1566_s10 = smov 8  }
   0x6   :  { %41 = dma.hbm_to_vmem [thread:$0]  %s34_s26, 4096, %s36_s28, [#allocation6], %s1565_s9, %s1565_s9, %s1566_s10  }
   0x7   :  { %s1567_s11 = smov [#allocation8]   ;;  %s20_s1 = sshll.u32 %s1651_s0, 4  ;;  %s21_s1 = int_to_ptr.hbm [resolvable:$true] %s20_s1 }
   0x8   :  { %s59_s12 = sshll.u32 %s1567_s11, 4  ;;  %s47_s16 = sshll.u32 %s1653_s2, 4  ;;  %s60_s12 = int_to_ptr.vmem [resolvable:$true] %s59_s12  ;;  %s48_s16 = int_to_ptr.hbm [resolvable:$true] %s47_s16 }
   0x9   :  { %65 = dma.hbm_to_vmem [thread:$0]  %s58_s8, 4096, %s60_s12, [#allocation9], %s1565_s9, %s1565_s9, %s1566_s10  }
   0xa   :  { %s1568_s17 = smov [#allocation2]   ;;  %s1569_s19 = smov [#allocation7]  }
   0xb   :  { %s22_s18 = sshll.u32 %s1568_s17, 4  ;;  %s49_s0 = sshll.u32 %s1569_s19, 4  ;;  %s23_s18 = int_to_ptr.vmem [resolvable:$true] %s22_s18  ;;  %s50_s0 = int_to_ptr.vmem [resolvable:$true] %s49_s0 }
   0xc   :  { %28 = dma.hbm_to_vmem [thread:$0]  %s21_s1, 256, %s23_s18, [#allocation3], %s1565_s9, %s1565_s9, %s1566_s10  }
   0xd   :  { %s72_s22 = sshll.u32 %s1656_s5, 4  ;;  %s1570_s23 = smov [#allocation10]   ;;  %s73_s22 = int_to_ptr.hbm [resolvable:$true] %s72_s22 }
   0xe   :  { %52 = dma.hbm_to_vmem [thread:$0]  %s48_s16, 32, %s50_s0, [#allocation6]  }
   0xf   :  { %s74_s24 = sshll.u32 %s1570_s23, 4  ;;  %s75_s24 = int_to_ptr.vmem [resolvable:$true] %s74_s24 }
  0x10   :  { %80 = dma.hbm_to_vmem [thread:$0]  %s73_s22, 4096, %s75_s24, [#allocation9], %s1565_s9, %s1565_s9, %s1566_s10  }
  0x11   :  { %1556 = dma.done.wait [#allocation3], 256  }
  0x12   :  { %1557 = vsyncadd [#allocation3], 4294967040 }
  0x13   :  { %1558 = dma.done.wait [#allocation6], 4128  }
  0x14   :  { %1559 = vsyncadd [#allocation6], 4294963168 }
  0x15   :  { %1560 = dma.done.wait [#allocation9], 8192  }
  0x16   :  { %1561 = vsyncadd [#allocation9], 4294959104  ;;  %v980_v0 = vld [vmem:[#allocation5 + $0x70] sm:$0xf]  ;;  %v1323_v1 = vld [vmem:[#allocation5 + $0x74] sm:$0xf0] }
  0x17   :  { %v1044_v2 = vld [vmem:[#allocation5 + $0xf0] sm:$0xf]  ;;  %v981_v3 = vor.u32 %v1323_v1, %v980_v0  ;;  %v1339_v4 = vld [vmem:[#allocation5 + $0xf4] sm:$0xf0]  ;;  %v1322_v5 = vld [vmem:[#allocation5 + $0x74] sm:$0xf] }
  0x18   :  { %v982_v6 = vld [vmem:[#allocation5 + $0x78] sm:$0xf0]  ;;  %v1045_v7 = vor.u32 %v1339_v4, %v1044_v2  ;;  %v1338_v9 = vld [vmem:[#allocation5 + $0xf4] sm:$0xf]  ;;  %v972_v11 = vld [vmem:[#allocation5 + $0x60] sm:$0xf] }
  0x19   :  { %v985_v8 = vor.u32 %v1322_v5, %v982_v6  ;;  %v1046_v10 = vld [vmem:[#allocation5 + $0xf8] sm:$0xf0]  ;;  %313 = vmatpush.bf16.msra.mxu0 %v981_v3  ;;  %v1321_v13 = vld [vmem:[#allocation5 + $0x64] sm:$0xf0]  ;;  %v1036_v14 = vld [vmem:[#allocation5 + $0xe0] sm:$0xf] }
  0x1a   :  { %v1049_v12 = vor.u32 %v1338_v9, %v1046_v10  ;;  %v1337_v15 = vld [vmem:[#allocation5 + $0xe4] sm:$0xf0]  ;;  %327 = vmatpush.bf16.msra.mxu1 %v1045_v7  ;;  %v973_v16 = vor.u32 %v1321_v13, %v972_v11  ;;  %v1320_v18 = vld [vmem:[#allocation5 + $0x64] sm:$0xf]  ;;  %v974_v19 = vld [vmem:[#allocation5 + $0x68] sm:$0xf0] }
  0x1b   :  { %341 = vmatpush.bf16.msra.mxu2 %v985_v8  ;;  %v1037_v17 = vor.u32 %v1337_v15, %v1036_v14  ;;  %v1336_v20 = vld [vmem:[#allocation5 + $0xe4] sm:$0xf]  ;;  %v977_v21 = vor.u32 %v1320_v18, %v974_v19  ;;  %v1038_v22 = vld [vmem:[#allocation5 + $0xe8] sm:$0xf0]  ;;  %v964_v23 = vld [vmem:[#allocation5 + $0x50] sm:$0xf] }
  0x1c   :  { %355 = vmatpush.bf16.msra.mxu3 %v1049_v12  ;;  %v1319_v24 = vld [vmem:[#allocation5 + $0x54] sm:$0xf0]  ;;  %v1041_v25 = vor.u32 %v1336_v20, %v1038_v22  ;;  %v1028_v26 = vld [vmem:[#allocation5 + $0xd0] sm:$0xf]  ;;  %v1318_v28 = vld [vmem:[#allocation5 + $0x54] sm:$0xf] }
  0x1d   :  { %v1335_v27 = vld [vmem:[#allocation5 + $0xd4] sm:$0xf0]  ;;  %314 = vmatpush.bf16.msra.mxu0 %v973_v16  ;;  %v965_v29 = vor.u32 %v1319_v24, %v964_v23  ;;  %v966_v30 = vld [vmem:[#allocation5 + $0x58] sm:$0xf0]  ;;  %v1334_v31 = vld [vmem:[#allocation5 + $0xd4] sm:$0xf] }
  0x1e   :  { %v1030_v32 = vld [vmem:[#allocation5 + $0xd8] sm:$0xf0]  ;;  %328 = vmatpush.bf16.msra.mxu1 %v1037_v17  ;;  %v1029_v33 = vor.u32 %v1335_v27, %v1028_v26  ;;  %v969_v34 = vor.u32 %v1318_v28, %v966_v30  ;;  %v956_v35 = vld [vmem:[#allocation5 + $0x40] sm:$0xf]  ;;  %v1317_v36 = vld [vmem:[#allocation5 + $0x44] sm:$0xf0] }
  0x1f   :  { %342 = vmatpush.bf16.msra.mxu2 %v977_v21  ;;  %v1020_v37 = vld [vmem:[#allocation5 + $0xc0] sm:$0xf]  ;;  %v1033_v38 = vor.u32 %v1334_v31, %v1030_v32  ;;  %v1333_v39 = vld [vmem:[#allocation5 + $0xc4] sm:$0xf0]  ;;  %v1316_v40 = vld [vmem:[#allocation5 + $0x44] sm:$0xf]  ;;  %v957_v44 = vor.u32 %v1317_v36, %v956_v35 }
  0x20   :  { %356 = vmatpush.bf16.msra.mxu3 %v1041_v25  ;;  %v958_v41 = vld [vmem:[#allocation5 + $0x48] sm:$0xf0]  ;;  %v1332_v42 = vld [vmem:[#allocation5 + $0xc4] sm:$0xf]  ;;  %v1021_v45 = vor.u32 %v1333_v39, %v1020_v37  ;;  %v948_v47 = vld [vmem:[#allocation5 + $0x30] sm:$0xf] }
  0x21   :  { %v1022_v43 = vld [vmem:[#allocation5 + $0xc8] sm:$0xf0]  ;;  %315 = vmatpush.bf16.msra.mxu0 %v965_v29  ;;  %v961_v46 = vor.u32 %v1316_v40, %v958_v41  ;;  %v1315_v48 = vld [vmem:[#allocation5 + $0x34] sm:$0xf0]  ;;  %v1012_v49 = vld [vmem:[#allocation5 + $0xb0] sm:$0xf] }
  0x22   :  { %329 = vmatpush.bf16.msra.mxu1 %v1029_v33  ;;  %v1025_v50 = vor.u32 %v1332_v42, %v1022_v43  ;;  %v1331_v51 = vld [vmem:[#allocation5 + $0xb4] sm:$0xf0]  ;;  %v1314_v52 = vld [vmem:[#allocation5 + $0x34] sm:$0xf]  ;;  %v950_v53 = vld [vmem:[#allocation5 + $0x38] sm:$0xf0]  ;;  %v949_v56 = vor.u32 %v1315_v48, %v948_v47 }
  0x23   :  { %343 = vmatpush.bf16.msra.mxu2 %v969_v34  ;;  %v1330_v54 = vld [vmem:[#allocation5 + $0xb4] sm:$0xf]  ;;  %v1014_v55 = vld [vmem:[#allocation5 + $0xb8] sm:$0xf0]  ;;  %v1013_v57 = vor.u32 %v1331_v51, %v1012_v49  ;;  %v953_v58 = vor.u32 %v1314_v52, %v950_v53  ;;  %v940_v59 = vld [vmem:[#allocation5 + $0x20] sm:$0xf] }
  0x24   :  { %357 = vmatpush.bf16.msra.mxu3 %v1033_v38  ;;  %v1313_v60 = vld [vmem:[#allocation5 + $0x24] sm:$0xf0]  ;;  %v1004_v61 = vld [vmem:[#allocation5 + $0xa0] sm:$0xf]  ;;  %v1017_v62 = vor.u32 %v1330_v54, %v1014_v55  ;;  %v1312_v0 = vld [vmem:[#allocation5 + $0x24] sm:$0xf] }
  0x25   :  { %316 = vmatpush.bf16.msra.mxu0 %v957_v44  ;;  %v1329_v63 = vld [vmem:[#allocation5 + $0xa4] sm:$0xf0]  ;;  %v942_v1 = vld [vmem:[#allocation5 + $0x28] sm:$0xf0]  ;;  %v1328_v2 = vld [vmem:[#allocation5 + $0xa4] sm:$0xf]  ;;  %v941_v4 = vor.u32 %v1313_v60, %v940_v59 }
  0x26   :  { %330 = vmatpush.bf16.msra.mxu1 %v1021_v45  ;;  %v1006_v3 = vld [vmem:[#allocation5 + $0xa8] sm:$0xf0]  ;;  %v1005_v5 = vor.u32 %v1329_v63, %v1004_v61  ;;  %v945_v6 = vor.u32 %v1312_v0, %v942_v1  ;;  %v932_v7 = vld [vmem:[#allocation5 + $0x10] sm:$0xf]  ;;  %v1311_v8 = vld [vmem:[#allocation5 + $0x14] sm:$0xf0] }
  0x27   :  { %344 = vmatpush.bf16.msra.mxu2 %v961_v46  ;;  %v996_v9 = vld [vmem:[#allocation5 + $0x90] sm:$0xf]  ;;  %v1009_v10 = vor.u32 %v1328_v2, %v1006_v3  ;;  %v1327_v11 = vld [vmem:[#allocation5 + $0x94] sm:$0xf0]  ;;  %v1310_v12 = vld [vmem:[#allocation5 + $0x14] sm:$0xf]  ;;  %v933_v16 = vor.u32 %v1311_v8, %v932_v7 }
  0x28   :  { %358 = vmatpush.bf16.msra.mxu3 %v1025_v50  ;;  %v934_v13 = vld [vmem:[#allocation5 + $0x18] sm:$0xf0]  ;;  %v1326_v14 = vld [vmem:[#allocation5 + $0x94] sm:$0xf]  ;;  %v924_v17 = vld [vmem:[#allocation5] sm:$0xf]  ;;  %v997_v19 = vor.u32 %v1327_v11, %v996_v9 }
  0x29   :  { %317 = vmatpush.bf16.msra.mxu0 %v949_v56  ;;  %v998_v15 = vld [vmem:[#allocation5 + $0x98] sm:$0xf0]  ;;  %v1309_v18 = vld [vmem:[#allocation5 + $0x4] sm:$0xf0]  ;;  %v937_v20 = vor.u32 %v1310_v12, %v934_v13  ;;  %v988_v21 = vld [vmem:[#allocation5 + $0x80] sm:$0xf] }
  0x2a   :  { %331 = vmatpush.bf16.msra.mxu1 %v1013_v57  ;;  %v1325_v22 = vld [vmem:[#allocation5 + $0x84] sm:$0xf0]  ;;  %v1308_v23 = vld [vmem:[#allocation5 + $0x4] sm:$0xf]  ;;  %v1001_v24 = vor.u32 %v1326_v14, %v998_v15  ;;  %v926_v25 = vld [vmem:[#allocation5 + $0x8] sm:$0xf0]  ;;  %v925_v31 = vor.u32 %v1309_v18, %v924_v17 }
  0x2b   :  { %345 = vmatpush.bf16.msra.mxu2 %v953_v58  ;;  %v1324_v26 = vld [vmem:[#allocation5 + $0x84] sm:$0xf]  ;;  %v990_v27 = vld [vmem:[#allocation5 + $0x88] sm:$0xf0]  ;;  %v916_v28 = vld [vmem:[#allocation2] sm:$0xf]  ;;  %v989_v35 = vor.u32 %v1325_v22, %v988_v21  ;;  %v929_v36 = vor.u32 %v1308_v23, %v926_v25 }
  0x2c   :  { %359 = vmatpush.bf16.msra.mxu3 %v1017_v62  ;;  %v1108_v29 = vld [vmem:[#allocation8 + $0x70] sm:$0xf]  ;;  %v1355_v30 = vld [vmem:[#allocation8 + $0x74] sm:$0xf0]  ;;  %v1354_v33 = vld [vmem:[#allocation8 + $0x74] sm:$0xf]  ;;  %v993_v39 = vor.u32 %v1324_v26, %v990_v27 }
  0x2d   :  { %318 = vmatpush.bf16.msra.mxu0 %v941_v4  ;;  %v1307_v32 = vld [vmem:[#allocation2 + $0x4] sm:$0xf0]  ;;  %v1110_v34 = vld [vmem:[#allocation8 + $0x78] sm:$0xf0]  ;;  %v1306_v37 = vld [vmem:[#allocation2 + $0x4] sm:$0xf]  ;;  %v1109_v40 = vor.u32 %v1355_v30, %v1108_v29 }
  0x2e   :  { %332 = vmatpush.bf16.msra.mxu1 %v1005_v5  ;;  %v918_v38 = vld [vmem:[#allocation2 + $0x8] sm:$0xf0]  ;;  %v1100_v41 = vld [vmem:[#allocation8 + $0x60] sm:$0xf]  ;;  %v1172_v42 = vld [vmem:[#allocation8 + $0xf0] sm:$0xf]  ;;  %v917_v44 = vor.u32 %v1307_v32, %v916_v28  ;;  %v1113_v45 = vor.u32 %v1354_v33, %v1110_v34 }
  0x2f   :  { %346 = vmatpush.bf16.msra.mxu2 %v945_v6  ;;  %v1371_v43 = vld [vmem:[#allocation8 + $0xf4] sm:$0xf0]  ;;  %v1353_v46 = vld [vmem:[#allocation8 + $0x64] sm:$0xf0]  ;;  %v1370_v47 = vld [vmem:[#allocation8 + $0xf4] sm:$0xf]  ;;  %v921_v49 = vor.u32 %v1306_v37, %v918_v38 }
  0x30   :  { %360 = vmatpush.bf16.msra.mxu3 %v1009_v10  ;;  %v1174_v48 = vld [vmem:[#allocation8 + $0xf8] sm:$0xf0]  ;;  %v1352_v50 = vld [vmem:[#allocation8 + $0x64] sm:$0xf]  ;;  %v1102_v51 = vld [vmem:[#allocation8 + $0x68] sm:$0xf0]  ;;  %v1173_v52 = vor.u32 %v1371_v43, %v1172_v42  ;;  %v1101_v53 = vor.u32 %v1353_v46, %v1100_v41 }
  0x31   :  { %319 = vmatpush.bf16.msra.mxu0 %v933_v16  ;;  %v1177_v54 = vor.u32 %v1370_v47, %v1174_v48  ;;  %v1092_v55 = vld [vmem:[#allocation8 + $0x50] sm:$0xf]  ;;  %v1164_v56 = vld [vmem:[#allocation8 + $0xe0] sm:$0xf]  ;;  %v1369_v57 = vld [vmem:[#allocation8 + $0xe4] sm:$0xf0]  ;;  %v1105_v58 = vor.u32 %v1352_v50, %v1102_v51 }
  0x32   :  { %333 = vmatpush.bf16.msra.mxu1 %v997_v19  ;;  %v1351_v59 = vld [vmem:[#allocation8 + $0x54] sm:$0xf0]  ;;  %v1368_v60 = vld [vmem:[#allocation8 + $0xe4] sm:$0xf]  ;;  %v1166_v61 = vld [vmem:[#allocation8 + $0xe8] sm:$0xf0]  ;;  %v1165_v0 = vor.u32 %v1369_v57, %v1164_v56 }
  0x33   :  { %347 = vmatpush.bf16.msra.mxu2 %v937_v20  ;;  %v1350_v62 = vld [vmem:[#allocation8 + $0x54] sm:$0xf]  ;;  %v1094_v63 = vld [vmem:[#allocation8 + $0x58] sm:$0xf0]  ;;  %v1093_v1 = vor.u32 %v1351_v59, %v1092_v55  ;;  %v1169_v2 = vor.u32 %v1368_v60, %v1166_v61  ;;  %v1084_v4 = vld [vmem:[#allocation8 + $0x40] sm:$0xf] }
  0x34   :  { %361 = vmatpush.bf16.msra.mxu3 %v1001_v24  ;;  %v1097_v3 = vor.u32 %v1350_v62, %v1094_v63  ;;  %v1349_v5 = vld [vmem:[#allocation8 + $0x44] sm:$0xf0]  ;;  %v1348_v6 = vld [vmem:[#allocation8 + $0x44] sm:$0xf]  ;;  %v1086_v7 = vld [vmem:[#allocation8 + $0x48] sm:$0xf0] }
  0x35   :  { %320 = vmatpush.bf16.msra.mxu0 %v925_v31  ;;  %v1085_v8 = vor.u32 %v1349_v5, %v1084_v4  ;;  %v1089_v9 = vor.u32 %v1348_v6, %v1086_v7  ;;  %v1156_v10 = vld [vmem:[#allocation8 + $0xd0] sm:$0xf]  ;;  %v1367_v11 = vld [vmem:[#allocation8 + $0xd4] sm:$0xf0]  ;;  %v1366_v12 = vld [vmem:[#allocation8 + $0xd4] sm:$0xf] }
  0x36   :  { %334 = vmatpush.bf16.msra.mxu1 %v989_v35  ;;  %v1157_v13 = vor.u32 %v1367_v11, %v1156_v10  ;;  %v1158_v14 = vld [vmem:[#allocation8 + $0xd8] sm:$0xf0]  ;;  %v1076_v16 = vld [vmem:[#allocation8 + $0x30] sm:$0xf]  ;;  %v1347_v17 = vld [vmem:[#allocation8 + $0x34] sm:$0xf0] }
  0x37   :  { %348 = vmatpush.bf16.msra.mxu2 %v929_v36  ;;  %v1161_v15 = vor.u32 %v1366_v12, %v1158_v14  ;;  %v1346_v18 = vld [vmem:[#allocation8 + $0x34] sm:$0xf]  ;;  %v1077_v19 = vor.u32 %v1347_v17, %v1076_v16  ;;  %v1078_v20 = vld [vmem:[#allocation8 + $0x38] sm:$0xf0]  ;;  %v1148_v22 = vld [vmem:[#allocation8 + $0xc0] sm:$0xf] }
  0x38   :  { %362 = vmatpush.bf16.msra.mxu3 %v993_v39  ;;  %321 = vmatmul.bf16.vlgmr.msra.gmra.mxu0 %v917_v44  ;;  %v1081_v21 = vor.u32 %v1346_v18, %v1078_v20  ;;  %v1365_v23 = vld [vmem:[#allocation8 + $0xc4] sm:$0xf0]  ;;  %v1364_v24 = vld [vmem:[#allocation8 + $0xc4] sm:$0xf]  ;;  %v1150_v26 = vld [vmem:[#allocation8 + $0xc8] sm:$0xf0] }
  0x39   :  { %573 = vmatpush.bf16.msrb.mxu0 %v1109_v40  ;;  %335 = vmatmul.bf16.vlgmr.msra.gmra.mxu1 %v921_v49  ;;  %v1149_v25 = vor.u32 %v1365_v23, %v1148_v22  ;;  %v1153_v27 = vor.u32 %v1364_v24, %v1150_v26  ;;  %v1068_v28 = vld [vmem:[#allocation8 + $0x20] sm:$0xf]  ;;  %v1345_v29 = vld [vmem:[#allocation8 + $0x24] sm:$0xf0]  ;;  %v1344_v31 = vld [vmem:[#allocation8 + $0x24] sm:$0xf] }
  0x3a   :  { %349 = vmatmul.bf16.vlgmr.msra.gmra.mxu2 %v917_v44  ;;  %587 = vmatpush.bf16.msrb.mxu1 %v1173_v52  ;;  %v1069_v30 = vor.u32 %v1345_v29, %v1068_v28  ;;  %v1070_v32 = vld [vmem:[#allocation8 + $0x28] sm:$0xf0]  ;;  %v1140_v34 = vld [vmem:[#allocation8 + $0xb0] sm:$0xf]  ;;  %v1363_v35 = vld [vmem:[#allocation8 + $0xb4] sm:$0xf0] }
  0x3b   :  { %601 = vmatpush.bf16.msrb.mxu2 %v1113_v45  ;;  %363 = vmatmul.bf16.vlgmr.msra.gmra.mxu3 %v921_v49  ;;  %v1073_v33 = vor.u32 %v1344_v31, %v1070_v32  ;;  %v1362_v36 = vld [vmem:[#allocation8 + $0xb4] sm:$0xf]  ;;  %v1141_v37 = vor.u32 %v1363_v35, %v1140_v34  ;;  %v1142_v38 = vld [vmem:[#allocation8 + $0xb8] sm:$0xf0]  ;;  %v1060_v40 = vld [vmem:[#allocation8 + $0x10] sm:$0xf] }
  0x3c   :  { %615 = vmatpush.bf16.msrb.mxu3 %v1177_v54  ;;  %v1145_v39 = vor.u32 %v1362_v36, %v1142_v38  ;;  %v1343_v41 = vld [vmem:[#allocation8 + $0x14] sm:$0xf0]  ;;  %v1342_v42 = vld [vmem:[#allocation8 + $0x14] sm:$0xf]  ;;  %v1062_v44 = vld [vmem:[#allocation8 + $0x18] sm:$0xf0] }
  0x3d   :  { %574 = vmatpush.bf16.msrb.mxu0 %v1101_v53  ;;  %v1061_v43 = vor.u32 %v1343_v41, %v1060_v40  ;;  %v1065_v45 = vor.u32 %v1342_v42, %v1062_v44  ;;  %v1132_v46 = vld [vmem:[#allocation8 + $0xa0] sm:$0xf]  ;;  %v1361_v47 = vld [vmem:[#allocation8 + $0xa4] sm:$0xf0]  ;;  %v1360_v48 = vld [vmem:[#allocation8 + $0xa4] sm:$0xf] }
  0x3e   :  { %588 = vmatpush.bf16.msrb.mxu1 %v1165_v0  ;;  %v1133_v49 = vor.u32 %v1361_v47, %v1132_v46  ;;  %v1134_v50 = vld [vmem:[#allocation8 + $0xa8] sm:$0xf0]  ;;  %v1052_v52 = vld [vmem:[#allocation8] sm:$0xf]  ;;  %v1341_v53 = vld [vmem:[#allocation8 + $0x4] sm:$0xf0] }
  0x3f   :  { %602 = vmatpush.bf16.msrb.mxu2 %v1105_v58  ;;  %v1137_v51 = vor.u32 %v1360_v48, %v1134_v50  ;;  %v1340_v54 = vld [vmem:[#allocation8 + $0x4] sm:$0xf]  ;;  %v1053_v55 = vor.u32 %v1341_v53, %v1052_v52  ;;  %v1054_v56 = vld [vmem:[#allocation8 + $0x8] sm:$0xf0]  ;;  %v1124_v58 = vld [vmem:[#allocation8 + $0x90] sm:$0xf] }
  0x40   :  { %616 = vmatpush.bf16.msrb.mxu3 %v1169_v2  ;;  %v1057_v57 = vor.u32 %v1340_v54, %v1054_v56  ;;  %v1359_v59 = vld [vmem:[#allocation8 + $0x94] sm:$0xf0]  ;;  %v1358_v60 = vld [vmem:[#allocation8 + $0x94] sm:$0xf]  ;;  %v1126_v62 = vld [vmem:[#allocation8 + $0x98] sm:$0xf0] }
  0x41   :  { %575 = vmatpush.bf16.msrb.mxu0 %v1093_v1  ;;  %v1125_v61 = vor.u32 %v1359_v59, %v1124_v58  ;;  %v1129_v63 = vor.u32 %v1358_v60, %v1126_v62  ;;  %v1116_v0 = vld [vmem:[#allocation8 + $0x80] sm:$0xf]  ;;  %v1357_v1 = vld [vmem:[#allocation8 + $0x84] sm:$0xf0]  ;;  %v1356_v2 = vld [vmem:[#allocation8 + $0x84] sm:$0xf] }
  0x42   :  { %589 = vmatpush.bf16.msrb.mxu1 %v1157_v13  ;;  %v1118_v4 = vld [vmem:[#allocation8 + $0x88] sm:$0xf0]  ;;  %v1236_v6 = vld [vmem:[#allocation10 + $0x70] sm:$0xf]  ;;  %v1387_v7 = vld [vmem:[#allocation10 + $0x74] sm:$0xf0] }
  0x43   :  { %603 = vmatpush.bf16.msrb.mxu2 %v1097_v3  ;;  %v1117_v3 = vor.u32 %v1357_v1, %v1116_v0  ;;  %v1121_v5 = vor.u32 %v1356_v2, %v1118_v4  ;;  %v1238_v10 = vld [vmem:[#allocation10 + $0x78] sm:$0xf0]  ;;  %v1228_v11 = vld [vmem:[#allocation10 + $0x60] sm:$0xf]  ;;  %v1385_v12 = vld [vmem:[#allocation10 + $0x64] sm:$0xf0] }
  0x44   :  { %617 = vmatpush.bf16.msrb.mxu3 %v1161_v15  ;;  %v1384_v14 = vld [vmem:[#allocation10 + $0x64] sm:$0xf]  ;;  %v1230_v15 = vld [vmem:[#allocation10 + $0x68] sm:$0xf0]  ;;  %v1300_v16 = vld [vmem:[#allocation10 + $0xf0] sm:$0xf]  ;;  %v1229_v17 = vor.u32 %v1385_v12, %v1228_v11 }
  0x45   :  { %576 = vmatpush.bf16.msrb.mxu0 %v1085_v8  ;;  %v1386_v8 = vld [vmem:[#allocation10 + $0x74] sm:$0xf]  ;;  %v1403_v18 = vld [vmem:[#allocation10 + $0xf4] sm:$0xf0]  ;;  %v1302_v20 = vld [vmem:[#allocation10 + $0xf8] sm:$0xf0] }
  0x46   :  { %590 = vmatpush.bf16.msrb.mxu1 %v1149_v25  ;;  %v1241_v13 = vor.u32 %v1386_v8, %v1238_v10  ;;  %v1301_v22 = vor.u32 %v1403_v18, %v1300_v16  ;;  %v1220_v24 = vld [vmem:[#allocation10 + $0x50] sm:$0xf]  ;;  %v1383_v25 = vld [vmem:[#allocation10 + $0x54] sm:$0xf0]  ;;  %v1382_v26 = vld [vmem:[#allocation10 + $0x54] sm:$0xf] }
  0x47   :  { %604 = vmatpush.bf16.msrb.mxu2 %v1089_v9  ;;  %v1237_v9 = vor.u32 %v1387_v7, %v1236_v6  ;;  %v137_v28 = vld [vmem:[#allocation7] sm:$0x3]  ;;  %v1221_v29 = vor.u32 %v1383_v25, %v1220_v24  ;;  %v1401_v56 = vld [vmem:[#allocation10 + $0xe4] sm:$0xf0]  ;;  %v1294_v59 = vld [vmem:[#allocation10 + $0xe8] sm:$0xf0] }
  0x48   :  { %618 = vmatpush.bf16.msrb.mxu3 %v1153_v27  ;;  %v1222_v27 = vld [vmem:[#allocation10 + $0x58] sm:$0xf0]  ;;  %v139_v32 = vperm.slane %v137_v28, 0  ;;  %v140_v36 = vperm.slane %v137_v28, 1  ;;  %v1381_v62 = vld [vmem:[#allocation10 + $0x44] sm:$0xf0] }
  0x49   :  { %577 = vmatpush.bf16.msrb.mxu0 %v1077_v19  ;;  %v1402_v19 = vld [vmem:[#allocation10 + $0xf4] sm:$0xf]  ;;  %v1225_v31 = vor.u32 %v1382_v26, %v1222_v27  ;;  %v1214_v1 = vld [vmem:[#allocation10 + $0x48] sm:$0xf0]  ;;  %v1284_v2 = vld [vmem:[#allocation10 + $0xd0] sm:$0xf] }
  0x4a   :  { %591 = vmatpush.bf16.msrb.mxu1 %v1141_v37  ;;  %v1305_v23 = vor.u32 %v1402_v19, %v1302_v20  ;;  %v1398_v6 = vld [vmem:[#allocation10 + $0xd4] sm:$0xf]  ;;  %v1286_v7 = vld [vmem:[#allocation10 + $0xd8] sm:$0xf0]  ;;  %v1379_v10 = vld [vmem:[#allocation10 + $0x34] sm:$0xf0] }
  0x4b   :  { %605 = vmatpush.bf16.msrb.mxu2 %v1081_v21  ;;  %v1233_v21 = vor.u32 %v1384_v14, %v1230_v15  ;;  %v1289_v8 = vor.u32 %v1398_v6, %v1286_v7  ;;  %v1378_v11 = vld [vmem:[#allocation10 + $0x34] sm:$0xf]  ;;  %v1276_v15 = vld [vmem:[#allocation10 + $0xc0] sm:$0xf]  ;;  %v1397_v16 = vld [vmem:[#allocation10 + $0xc4] sm:$0xf0] }
  0x4c   :  { %619 = vmatpush.bf16.msrb.mxu3 %v1145_v39  ;;  %v1396_v18 = vld [vmem:[#allocation10 + $0xc4] sm:$0xf]  ;;  %v1278_v19 = vld [vmem:[#allocation10 + $0xc8] sm:$0xf0]  ;;  %v1268_v27 = vld [vmem:[#allocation10 + $0xb0] sm:$0xf] }
  0x4d   :  { %578 = vmatpush.bf16.msrb.mxu0 %v1069_v30  ;;  %v1281_v20 = vor.u32 %v1396_v18, %v1278_v19  ;;  %v1198_v25 = vld [vmem:[#allocation10 + $0x28] sm:$0xf0]  ;;  %v1395_v28 = vld [vmem:[#allocation10 + $0xb4] sm:$0xf0]  ;;  %s1571_s26 = smov [#allocation11]   ;;  %s899_s29 = sshll.u32 %s1658_s7, 4  ;;  %s900_s29 = int_to_ptr.hbm [resolvable:$true] %s899_s29 }
  0x4e   :  { %592 = vmatpush.bf16.msrb.mxu1 %v1133_v49 }
  0x4f   :  { %606 = vmatpush.bf16.msrb.mxu2 %v1073_v33 }
  0x50   :  { %620 = vmatpush.bf16.msrb.mxu3 %v1137_v51 }
  0x51   :  { %579 = vmatpush.bf16.msrb.mxu0 %v1061_v43 }
  0x52   :  { %593 = vmatpush.bf16.msrb.mxu1 %v1125_v61  ;;  %v1212_v61 = vld [vmem:[#allocation10 + $0x40] sm:$0xf] }
  0x53   :  { %607 = vmatpush.bf16.msrb.mxu2 %v1065_v45  ;;  %v1213_v0 = vor.u32 %v1381_v62, %v1212_v61  ;;  %v1246_v61 = vld [vmem:[#allocation10 + $0x88] sm:$0xf0] }
  0x54   :  { %621 = vmatpush.bf16.msrb.mxu3 %v1129_v63  ;;  %v1380_v63 = vld [vmem:[#allocation10 + $0x44] sm:$0xf] }
  0x55   :  { %580 = vmatpush.bf16.msrb.mxu0 %v1053_v55  ;;  %v1292_v55 = vld [vmem:[#allocation10 + $0xe0] sm:$0xf]  ;;  %v1217_v4 = vor.u32 %v1380_v63, %v1214_v1 }
  0x56   :  { %594 = vmatpush.bf16.msrb.mxu1 %v1117_v3  ;;  %v1293_v58 = vor.u32 %v1401_v56, %v1292_v55  ;;  %v1399_v3 = vld [vmem:[#allocation10 + $0xd4] sm:$0xf0]  ;;  %v1254_v55 = vld [vmem:[#allocation10 + $0x98] sm:$0xf0] }
  0x57   :  { %608 = vmatpush.bf16.msrb.mxu2 %v1057_v57  ;;  %v1400_v57 = vld [vmem:[#allocation10 + $0xe4] sm:$0xf] }
  0x58   :  { %622 = vmatpush.bf16.msrb.mxu3 %v1121_v5  ;;  %v1297_v60 = vor.u32 %v1400_v57, %v1294_v59  ;;  %v1285_v5 = vor.u32 %v1399_v3, %v1284_v2  ;;  %v1244_v57 = vld [vmem:[#allocation10 + $0x80] sm:$0xf]  ;;  %v1388_v59 = vld [vmem:[#allocation10 + $0x84] sm:$0xf] }
  0x59   :  { %833 = vmatpush.bf16.msra.mxu0 %v1237_v9  ;;  %v1204_v9 = vld [vmem:[#allocation10 + $0x30] sm:$0xf]  ;;  %v1249_v62 = vor.u32 %v1388_v59, %v1246_v61 }
  0x5a   :  { %847 = vmatpush.bf16.msra.mxu1 %v1301_v22  ;;  %v1205_v12 = vor.u32 %v1379_v10, %v1204_v9  ;;  %v1377_v22 = vld [vmem:[#allocation10 + $0x24] sm:$0xf0] }
  0x5b   :  { %861 = vmatpush.bf16.msra.mxu2 %v1241_v13  ;;  %v1206_v13 = vld [vmem:[#allocation10 + $0x38] sm:$0xf0] }
  0x5c   :  { %875 = vmatpush.bf16.msra.mxu3 %v1305_v23  ;;  %v1209_v14 = vor.u32 %v1378_v11, %v1206_v13  ;;  %v1376_v23 = vld [vmem:[#allocation10 + $0x24] sm:$0xf] }
  0x5d   :  { %834 = vmatpush.bf16.msra.mxu0 %v1229_v17  ;;  %v1277_v17 = vor.u32 %v1397_v16, %v1276_v15  ;;  %v1201_v26 = vor.u32 %v1376_v23, %v1198_v25 }
  0x5e   :  { %848 = vmatpush.bf16.msra.mxu1 %v1293_v58  ;;  %v1389_v58 = vld [vmem:[#allocation10 + $0x84] sm:$0xf0] }
  0x5f   :  { %862 = vmatpush.bf16.msra.mxu2 %v1233_v21  ;;  %v1196_v21 = vld [vmem:[#allocation10 + $0x20] sm:$0xf] }
  0x60   :  { %876 = vmatpush.bf16.msra.mxu3 %v1297_v60  ;;  %v1197_v24 = vor.u32 %v1377_v22, %v1196_v21  ;;  %v1245_v60 = vor.u32 %v1389_v58, %v1244_v57 }
  0x61   :  { %835 = vmatpush.bf16.msra.mxu0 %v1221_v29  ;;  %v1394_v29 = vld [vmem:[#allocation10 + $0xb4] sm:$0xf] }
  0x62   :  { %849 = vmatpush.bf16.msra.mxu1 %v1285_v5 }
  0x63   :  { %863 = vmatpush.bf16.msra.mxu2 %v1225_v31  ;;  %v1270_v31 = vld [vmem:[#allocation10 + $0xb8] sm:$0xf0] }
  0x64   :  { %877 = vmatpush.bf16.msra.mxu3 %v1289_v8 }
  0x65   :  { %836 = vmatpush.bf16.msra.mxu0 %v1213_v0  ;;  %v407_v0 = vld [vmem:[%s1655_s4] sm:$0x3] }
  0x66   :  { %850 = vmatpush.bf16.msra.mxu1 %v1277_v17  ;;  %v409_v3 = vperm.slane %v407_v0, 0  ;;  %v410_v8 = vperm.slane %v407_v0, 1 }
  0x67   :  { %864 = vmatpush.bf16.msra.mxu2 %v1217_v4 }
  0x68   :  { %878 = vmatpush.bf16.msra.mxu3 %v1281_v20 }
  0x69   :  { %837 = vmatpush.bf16.msra.mxu0 %v1205_v12 }
  0x6b   :  { %865 = vmatpush.bf16.msra.mxu2 %v1209_v14 }
  0x6d   :  { %838 = vmatpush.bf16.msra.mxu0 %v1197_v24  ;;  %v667_v24 = vld [vmem:[%s1657_s6] sm:$0x3]  ;;  %s897_s6 = sshll.u32 %s1571_s26, 4  ;;  %s898_s6 = int_to_ptr.vmem [resolvable:$true] %s897_s6 }
  0x6f   :  { %866 = vmatpush.bf16.msra.mxu2 %v1201_v26 }
  0xb5   :  { %v322_v30 = vpop.f32.mrf.mxu0 }
  0xb6   :  { %v336_v33 = vpop.f32.mrf.mxu1  ;;  %v323_v34 = vadd.f32 %v322_v30, %v139_v32  ;;  %v1269_v30 = vor.u32 %v1395_v28, %v1268_v27  ;;  %v669_v27 = vperm.slane %v667_v24, 0  ;;  %v670_v28 = vperm.slane %v667_v24, 1 }
  0xb8   :  { %v337_v39 = vadd.f32 %v336_v33, %v323_v34  ;;  %v1188_v33 = vld [vmem:[#allocation10 + $0x10] sm:$0xf]  ;;  %v1375_v34 = vld [vmem:[#allocation10 + $0x14] sm:$0xf0]  ;;  %851 = vmatpush.bf16.msra.mxu1 %v1269_v30 }
  0xba   :  { %v369_v44 = vmax.f32 %v337_v39, 0.0  ;;  %v1260_v39 = vld [vmem:[#allocation10 + $0xa0] sm:$0xf] }
  0xbd   :  { %v350_v35 = vpop.f32.mrf.mxu2  ;;  %v324_v38 = vpop.f32.mrf.mxu0 }
  0xbe   :  { %v364_v37 = vpop.f32.mrf.mxu3  ;;  %v325_v40 = vadd.f32 %v324_v38, %v139_v32  ;;  %v338_v41 = vpop.f32.mrf.mxu1  ;;  %v351_v43 = vadd.f32 %v350_v35, %v140_v36  ;;  %v1273_v32 = vor.u32 %v1394_v29, %v1270_v31  ;;  %v1374_v35 = vld [vmem:[#allocation10 + $0x14] sm:$0xf] }
  0xc0   :  { %v339_v42 = vadd.f32 %v338_v41, %v325_v40  ;;  %v365_v48 = vadd.f32 %v364_v37, %v351_v43  ;;  %v1190_v37 = vld [vmem:[#allocation10 + $0x18] sm:$0xf0]  ;;  %879 = vmatpush.bf16.msra.mxu3 %v1273_v32  ;;  %v1393_v40 = vld [vmem:[#allocation10 + $0xa4] sm:$0xf0]  ;;  %v1392_v41 = vld [vmem:[#allocation10 + $0xa4] sm:$0xf] }
  0xc1   :  { %v1193_v38 = vor.u32 %v1374_v35, %v1190_v37  ;;  %v1262_v43 = vld [vmem:[#allocation10 + $0xa8] sm:$0xf0] }
  0xc2   :  { %v371_v45 = vmax.f32 %v339_v42, 0.0  ;;  %v370_v52 = vmax.f32 %v365_v48, 0.0  ;;  %v1261_v42 = vor.u32 %v1393_v40, %v1260_v39 }
  0xc3   :  { %867 = vmatpush.bf16.msra.mxu2 %v1193_v38 }
  0xc4   :  { %v373_v46 = vpack.c.bf16 %v371_v45, %v369_v44  ;;  %v1265_v44 = vor.u32 %v1392_v41, %v1262_v43  ;;  %v1180_v45 = vld [vmem:[#allocation10] sm:$0xf]  ;;  %852 = vmatpush.bf16.msra.mxu1 %v1261_v42 }
  0xc5   :  { %v352_v47 = vpop.f32.mrf.mxu2 }
  0xc6   :  { %v353_v49 = vadd.f32 %v352_v47, %v140_v36  ;;  %v366_v50 = vpop.f32.mrf.mxu3  ;;  %581 = vmatmul.bf16.vlgmr.msrb.gmra.mxu0 %v373_v46  ;;  %609 = vmatmul.bf16.vlgmr.msrb.gmra.mxu2 %v373_v46  ;;  %v1189_v36 = vor.u32 %v1375_v34, %v1188_v33  ;;  %v1373_v46 = vld [vmem:[#allocation10 + $0x4] sm:$0xf0]  ;;  %v1372_v47 = vld [vmem:[#allocation10 + $0x4] sm:$0xf] }
  0xc7   :  { %v1181_v48 = vor.u32 %v1373_v46, %v1180_v45  ;;  %880 = vmatpush.bf16.msra.mxu3 %v1265_v44 }
  0xc8   :  { %v367_v51 = vadd.f32 %v366_v50, %v353_v49  ;;  %839 = vmatpush.bf16.msra.mxu0 %v1189_v36  ;;  %v1182_v49 = vld [vmem:[#allocation10 + $0x8] sm:$0xf0] }
  0xc9   :  { %v1185_v50 = vor.u32 %v1372_v47, %v1182_v49 }
  0xca   :  { %v372_v53 = vmax.f32 %v367_v51, 0.0  ;;  %v1252_v51 = vld [vmem:[#allocation10 + $0x90] sm:$0xf] }
  0xcb   :  { %868 = vmatpush.bf16.msra.mxu2 %v1185_v50 }
  0xcc   :  { %v374_v54 = vpack.c.bf16 %v372_v53, %v370_v52  ;;  %v1391_v52 = vld [vmem:[#allocation10 + $0x94] sm:$0xf0]  ;;  %v1390_v53 = vld [vmem:[#allocation10 + $0x94] sm:$0xf]  ;;  %840 = vmatpush.bf16.msra.mxu0 %v1181_v48 }
  0xcd   :  { %v1257_v56 = vor.u32 %v1390_v53, %v1254_v55 }
  0xce   :  { %595 = vmatmul.bf16.vlgmr.msrb.gmra.mxu1 %v374_v54  ;;  %623 = vmatmul.bf16.vlgmr.msrb.gmra.mxu3 %v374_v54  ;;  %v1253_v54 = vor.u32 %v1391_v52, %v1252_v51 }
  0xcf   :  { %881 = vmatpush.bf16.msra.mxu3 %v1257_v56 }
  0xd0   :  { %853 = vmatpush.bf16.msra.mxu1 %v1253_v54 }
  0xd3   :  { %882 = vmatpush.bf16.msra.mxu3 %v1249_v62 }
  0xd4   :  { %854 = vmatpush.bf16.msra.mxu1 %v1245_v60 }
 0x143   :  { %v582_v63 = vpop.f32.mrf.mxu0 }
 0x144   :  { %v583_v5 = vadd.f32 %v582_v63, %v409_v3 }
 0x149   :  { %v610_v2 = vpop.f32.mrf.mxu2 }
 0x14a   :  { %v611_v14 = vadd.f32 %v610_v2, %v410_v8 }
 0x14b   :  { %v596_v1 = vpop.f32.mrf.mxu1  ;;  %v584_v4 = vpop.f32.mrf.mxu0 }
 0x14c   :  { %v597_v7 = vadd.f32 %v596_v1, %v583_v5  ;;  %v585_v9 = vadd.f32 %v584_v4, %v409_v3 }
 0x14e   :  { %v629_v13 = vmax.f32 %v597_v7, 0.0 }
 0x151   :  { %v624_v6 = vpop.f32.mrf.mxu3  ;;  %v612_v12 = vpop.f32.mrf.mxu2 }
 0x152   :  { %v625_v16 = vadd.f32 %v624_v6, %v611_v14  ;;  %v613_v18 = vadd.f32 %v612_v12, %v410_v8 }
 0x153   :  { %v598_v10 = vpop.f32.mrf.mxu1 }
 0x154   :  { %v599_v11 = vadd.f32 %v598_v10, %v585_v9  ;;  %v630_v21 = vmax.f32 %v625_v16, 0.0 }
 0x156   :  { %v631_v15 = vmax.f32 %v599_v11, 0.0 }
 0x158   :  { %v633_v17 = vpack.c.bf16 %v631_v15, %v629_v13 }
 0x159   :  { %v626_v19 = vpop.f32.mrf.mxu3 }
 0x15a   :  { %v627_v20 = vadd.f32 %v626_v19, %v613_v18  ;;  %841 = vmatmul.bf16.vlgmr.msra.gmra.mxu0 %v633_v17  ;;  %869 = vmatmul.bf16.vlgmr.msra.gmra.mxu2 %v633_v17 }
 0x15c   :  { %v632_v22 = vmax.f32 %v627_v20, 0.0 }
 0x15e   :  { %v634_v23 = vpack.c.bf16 %v632_v22, %v630_v21 }
 0x160   :  { %855 = vmatmul.bf16.vlgmr.msra.gmra.mxu1 %v634_v23  ;;  %883 = vmatmul.bf16.vlgmr.msra.gmra.mxu3 %v634_v23 }
 0x1d7   :  { %v842_v25 = vpop.f32.mrf.mxu0 }
 0x1d8   :  { %v843_v30 = vadd.f32 %v842_v25, %v669_v27 }
 0x1dd   :  { %v870_v26 = vpop.f32.mrf.mxu2  ;;  %v856_v29 = vpop.f32.mrf.mxu1 }
 0x1de   :  { %v871_v31 = vadd.f32 %v870_v26, %v670_v28  ;;  %v857_v33 = vadd.f32 %v856_v29, %v843_v30 }
 0x1df   :  { %v844_v36 = vpop.f32.mrf.mxu0 }
 0x1e0   :  { %v845_v39 = vadd.f32 %v844_v36, %v669_v27 }
 0x1e3   :  { %v884_v32 = vpop.f32.mrf.mxu3 }
 0x1e4   :  { %v885_v34 = vadd.f32 %v884_v32, %v871_v31 }
 0x1e5   :  { %v872_v37 = vpop.f32.mrf.mxu2  ;;  %v858_v38 = vpop.f32.mrf.mxu1 }
 0x1e6   :  { %v889_v35 = vpack.c.bf16 %v885_v34, %v857_v33  ;;  %v873_v40 = vadd.f32 %v872_v37, %v670_v28  ;;  %v859_v42 = vadd.f32 %v858_v38, %v845_v39 }
 0x1e8   :  { %891 = vst [vmem:[#allocation11] sm:$0xff] %v889_v35 }
 0x1eb   :  { %v886_v41 = vpop.f32.mrf.mxu3 }
 0x1ec   :  { %v887_v43 = vadd.f32 %v886_v41, %v873_v40 }
 0x1ee   :  { %v890_v44 = vpack.c.bf16 %v887_v43, %v859_v42 }
 0x1f0   :  { %892 = vst [vmem:[#allocation11 + $0x8] sm:$0xff] %v890_v44 }
 0x1f1   :  { %905 = dma.vmem_to_hbm [thread:$0]  %s898_s6, 256, %s900_s29, [#allocation4], %s1565_s9, %s1565_s9, %s1566_s10  }
 0x1f2   :  { %1562 = dma.done.wait [#allocation4], 256  }
 0x1f3   :  { %1563 = vsyncadd [#allocation4], 4294967040 }
 0x1f4   :  { %910 = vsyncpa [#allocation3], 1 }
 0x1f5   :  { %911 = vsyncpa [#allocation6], 1 }
 0x1f6   :  { %912 = vsyncpa [#allocation9], 1 }
 0x1f7   :  { %913 = vsyncpa [#allocation4], 1 }

// kernel: tpu_custom_call.1
= control target key start
LH: loop header
LB: loop body
LE: loop exit
PB: predicated region body
PF: predicated region fallthrough
CT: control target
= control target key end

     0   :  { %12 = vsyncpa [#allocation3], 0  ;;  %s1651_s0 = inlined_call_operand.hbm [shape: bf16[16,256], index: 0, kind: input, shape index: {}]   ;;  %s1652_s1 = inlined_call_operand.hbm [shape: bf16[256,256], index: 1, kind: input, shape index: {}]   ;;  %s1653_s2 = inlined_call_operand.hbm [shape: f32[1,256], index: 2, kind: input, shape index: {}]   ;;  %s1654_s3 = inlined_call_operand.hbm [shape: bf16[256,256], index: 3, kind: input, shape index: {}]   ;;  %s1655_s4 = inlined_call_operand.vmem [shape: f32[1,256], index: 4, kind: input, shape index: {}]   ;;  %s1656_s5 = inlined_call_operand.hbm [shape: bf16[256,256], index: 5, kind: input, shape index: {}]   ;;  %s1657_s6 = inlined_call_operand.vmem [shape: f32[1,256], index: 6, kind: input, shape index: {}]   ;;  %s1658_s7 = inlined_call_operand.hbm [shape: bf16[16,256], index: 7, kind: output, shape index: {}]  }
   0x1   :  { %13 = vsyncpa [#allocation6], 0 }
   0x2   :  { %14 = vsyncpa [#allocation9], 0 }
   0x3   :  { %15 = vsyncpa [#allocation4], 0  ;;  %s33_s26 = sshll.u32 %s1652_s1, 4  ;;  %s1564_s27 = smov [#allocation5]   ;;  %s34_s26 = int_to_ptr.hbm [resolvable:$true] %s33_s26 }
   0x4   :  { %s35_s28 = sshll.u32 %s1564_s27, 4  ;;  %s57_s8 = sshll.u32 %s1654_s3, 4  ;;  %s36_s28 = int_to_ptr.vmem [resolvable:$true] %s35_s28  ;;  %s58_s8 = int_to_ptr.hbm [resolvable:$true] %s57_s8 }
   0x5   :  { %s1565_s9 = smov 128   ;;  %s1566_s10 = smov 8  }
   0x6   :  { %41 = dma.hbm_to_vmem [thread:$0]  %s34_s26, 4096, %s36_s28, [#allocation6], %s1565_s9, %s1565_s9, %s1566_s10  }
   0x7   :  { %s1567_s11 = smov [#allocation8]   ;;  %s20_s1 = sshll.u32 %s1651_s0, 4  ;;  %s21_s1 = int_to_ptr.hbm [resolvable:$true] %s20_s1 }
   0x8   :  { %s59_s12 = sshll.u32 %s1567_s11, 4  ;;  %s47_s16 = sshll.u32 %s1653_s2, 4  ;;  %s60_s12 = int_to_ptr.vmem [resolvable:$true] %s59_s12  ;;  %s48_s16 = int_to_ptr.hbm [resolvable:$true] %s47_s16 }
   0x9   :  { %65 = dma.hbm_to_vmem [thread:$0]  %s58_s8, 4096, %s60_s12, [#allocation9], %s1565_s9, %s1565_s9, %s1566_s10  }
   0xa   :  { %s1568_s17 = smov [#allocation2]   ;;  %s1569_s19 = smov [#allocation7]  }
   0xb   :  { %s22_s18 = sshll.u32 %s1568_s17, 4  ;;  %s49_s0 = sshll.u32 %s1569_s19, 4  ;;  %s23_s18 = int_to_ptr.vmem [resolvable:$true] %s22_s18  ;;  %s50_s0 = int_to_ptr.vmem [resolvable:$true] %s49_s0 }
   0xc   :  { %28 = dma.hbm_to_vmem [thread:$0]  %s21_s1, 256, %s23_s18, [#allocation3], %s1565_s9, %s1565_s9, %s1566_s10  }
   0xd   :  { %s72_s22 = sshll.u32 %s1656_s5, 4  ;;  %s1570_s23 = smov [#allocation10]   ;;  %s73_s22 = int_to_ptr.hbm [resolvable:$true] %s72_s22 }
   0xe   :  { %52 = dma.hbm_to_vmem [thread:$0]  %s48_s16, 32, %s50_s0, [#allocation6]  }
   0xf   :  { %s74_s24 = sshll.u32 %s1570_s23, 4  ;;  %s75_s24 = int_to_ptr.vmem [resolvable:$true] %s74_s24 }
  0x10   :  { %80 = dma.hbm_to_vmem [thread:$0]  %s73_s22, 4096, %s75_s24, [#allocation9], %s1565_s9, %s1565_s9, %s1566_s10  }
  0x11   :  { %1556 = dma.done.wait [#allocation3], 256  }
  0x12   :  { %1557 = vsyncadd [#allocation3], 4294967040 }
  0x13   :  { %1558 = dma.done.wait [#allocation6], 4128  }
  0x14   :  { %1559 = vsyncadd [#allocation6], 4294963168 }
  0x15   :  { %1560 = dma.done.wait [#allocation9], 8192  }
  0x16   :  { %1561 = vsyncadd [#allocation9], 4294959104  ;;  %v980_v0 = vld [vmem:[#allocation5 + $0x70] sm:$0xf]  ;;  %v1323_v1 = vld [vmem:[#allocation5 + $0x74] sm:$0xf0] }
  0x17   :  { %v1044_v2 = vld [vmem:[#allocation5 + $0xf0] sm:$0xf]  ;;  %v981_v3 = vor.u32 %v1323_v1, %v980_v0  ;;  %v1339_v4 = vld [vmem:[#allocation5 + $0xf4] sm:$0xf0]  ;;  %v1322_v5 = vld [vmem:[#allocation5 + $0x74] sm:$0xf] }
  0x18   :  { %v982_v6 = vld [vmem:[#allocation5 + $0x78] sm:$0xf0]  ;;  %v1045_v7 = vor.u32 %v1339_v4, %v1044_v2  ;;  %v1338_v9 = vld [vmem:[#allocation5 + $0xf4] sm:$0xf]  ;;  %v972_v11 = vld [vmem:[#allocation5 + $0x60] sm:$0xf] }
  0x19   :  { %v985_v8 = vor.u32 %v1322_v5, %v982_v6  ;;  %v1046_v10 = vld [vmem:[#allocation5 + $0xf8] sm:$0xf0]  ;;  %313 = vmatpush.bf16.msra.mxu0 %v981_v3  ;;  %v1321_v13 = vld [vmem:[#allocation5 + $0x64] sm:$0xf0]  ;;  %v1036_v14 = vld [vmem:[#allocation5 + $0xe0] sm:$0xf] }
  0x1a   :  { %v1049_v12 = vor.u32 %v1338_v9, %v1046_v10  ;;  %v1337_v15 = vld [vmem:[#allocation5 + $0xe4] sm:$0xf0]  ;;  %327 = vmatpush.bf16.msra.mxu1 %v1045_v7  ;;  %v973_v16 = vor.u32 %v1321_v13, %v972_v11  ;;  %v1320_v18 = vld [vmem:[#allocation5 + $0x64] sm:$0xf]  ;;  %v974_v19 = vld [vmem:[#allocation5 + $0x68] sm:$0xf0] }
  0x1b   :  { %341 = vmatpush.bf16.msra.mxu2 %v985_v8  ;;  %v1037_v17 = vor.u32 %v1337_v15, %v1036_v14  ;;  %v1336_v20 = vld [vmem:[#allocation5 + $0xe4] sm:$0xf]  ;;  %v977_v21 = vor.u32 %v1320_v18, %v974_v19  ;;  %v1038_v22 = vld [vmem:[#allocation5 + $0xe8] sm:$0xf0]  ;;  %v964_v23 = vld [vmem:[#allocation5 + $0x50] sm:$0xf] }
  0x1c   :  { %355 = vmatpush.bf16.msra.mxu3 %v1049_v12  ;;  %v1319_v24 = vld [vmem:[#allocation5 + $0x54] sm:$0xf0]  ;;  %v1041_v25 = vor.u32 %v1336_v20, %v1038_v22  ;;  %v1028_v26 = vld [vmem:[#allocation5 + $0xd0] sm:$0xf]  ;;  %v1318_v28 = vld [vmem:[#allocation5 + $0x54] sm:$0xf] }
  0x1d   :  { %v1335_v27 = vld [vmem:[#allocation5 + $0xd4] sm:$0xf0]  ;;  %314 = vmatpush.bf16.msra.mxu0 %v973_v16  ;;  %v965_v29 = vor.u32 %v1319_v24, %v964_v23  ;;  %v966_v30 = vld [vmem:[#allocation5 + $0x58] sm:$0xf0]  ;;  %v1334_v31 = vld [vmem:[#allocation5 + $0xd4] sm:$0xf] }
  0x1e   :  { %v1030_v32 = vld [vmem:[#allocation5 + $0xd8] sm:$0xf0]  ;;  %328 = vmatpush.bf16.msra.mxu1 %v1037_v17  ;;  %v1029_v33 = vor.u32 %v1335_v27, %v1028_v26  ;;  %v969_v34 = vor.u32 %v1318_v28, %v966_v30  ;;  %v956_v35 = vld [vmem:[#allocation5 + $0x40] sm:$0xf]  ;;  %v1317_v36 = vld [vmem:[#allocation5 + $0x44] sm:$0xf0] }
  0x1f   :  { %342 = vmatpush.bf16.msra.mxu2 %v977_v21  ;;  %v1020_v37 = vld [vmem:[#allocation5 + $0xc0] sm:$0xf]  ;;  %v1033_v38 = vor.u32 %v1334_v31, %v1030_v32  ;;  %v1333_v39 = vld [vmem:[#allocation5 + $0xc4] sm:$0xf0]  ;;  %v1316_v40 = vld [vmem:[#allocation5 + $0x44] sm:$0xf]  ;;  %v957_v44 = vor.u32 %v1317_v36, %v956_v35 }
  0x20   :  { %356 = vmatpush.bf16.msra.mxu3 %v1041_v25  ;;  %v958_v41 = vld [vmem:[#allocation5 + $0x48] sm:$0xf0]  ;;  %v1332_v42 = vld [vmem:[#allocation5 + $0xc4] sm:$0xf]  ;;  %v1021_v45 = vor.u32 %v1333_v39, %v1020_v37  ;;  %v948_v47 = vld [vmem:[#allocation5 + $0x30] sm:$0xf] }
  0x21   :  { %v1022_v43 = vld [vmem:[#allocation5 + $0xc8] sm:$0xf0]  ;;  %315 = vmatpush.bf16.msra.mxu0 %v965_v29  ;;  %v961_v46 = vor.u32 %v1316_v40, %v958_v41  ;;  %v1315_v48 = vld [vmem:[#allocation5 + $0x34] sm:$0xf0]  ;;  %v1012_v49 = vld [vmem:[#allocation5 + $0xb0] sm:$0xf] }
  0x22   :  { %329 = vmatpush.bf16.msra.mxu1 %v1029_v33  ;;  %v1025_v50 = vor.u32 %v1332_v42, %v1022_v43  ;;  %v1331_v51 = vld [vmem:[#allocation5 + $0xb4] sm:$0xf0]  ;;  %v1314_v52 = vld [vmem:[#allocation5 + $0x34] sm:$0xf]  ;;  %v950_v53 = vld [vmem:[#allocation5 + $0x38] sm:$0xf0]  ;;  %v949_v56 = vor.u32 %v1315_v48, %v948_v47 }
  0x23   :  { %343 = vmatpush.bf16.msra.mxu2 %v969_v34  ;;  %v1330_v54 = vld [vmem:[#allocation5 + $0xb4] sm:$0xf]  ;;  %v1014_v55 = vld [vmem:[#allocation5 + $0xb8] sm:$0xf0]  ;;  %v1013_v57 = vor.u32 %v1331_v51, %v1012_v49  ;;  %v953_v58 = vor.u32 %v1314_v52, %v950_v53  ;;  %v940_v59 = vld [vmem:[#allocation5 + $0x20] sm:$0xf] }
  0x24   :  { %357 = vmatpush.bf16.msra.mxu3 %v1033_v38  ;;  %v1313_v60 = vld [vmem:[#allocation5 + $0x24] sm:$0xf0]  ;;  %v1004_v61 = vld [vmem:[#allocation5 + $0xa0] sm:$0xf]  ;;  %v1017_v62 = vor.u32 %v1330_v54, %v1014_v55  ;;  %v1312_v0 = vld [vmem:[#allocation5 + $0x24] sm:$0xf] }
  0x25   :  { %316 = vmatpush.bf16.msra.mxu0 %v957_v44  ;;  %v1329_v63 = vld [vmem:[#allocation5 + $0xa4] sm:$0xf0]  ;;  %v942_v1 = vld [vmem:[#allocation5 + $0x28] sm:$0xf0]  ;;  %v1328_v2 = vld [vmem:[#allocation5 + $0xa4] sm:$0xf]  ;;  %v941_v4 = vor.u32 %v1313_v60, %v940_v59 }
  0x26   :  { %330 = vmatpush.bf16.msra.mxu1 %v1021_v45  ;;  %v1006_v3 = vld [vmem:[#allocation5 + $0xa8] sm:$0xf0]  ;;  %v1005_v5 = vor.u32 %v1329_v63, %v1004_v61  ;;  %v945_v6 = vor.u32 %v1312_v0, %v942_v1  ;;  %v932_v7 = vld [vmem:[#allocation5 + $0x10] sm:$0xf]  ;;  %v1311_v8 = vld [vmem:[#allocation5 + $0x14] sm:$0xf0] }
  0x27   :  { %344 = vmatpush.bf16.msra.mxu2 %v961_v46  ;;  %v996_v9 = vld [vmem:[#allocation5 + $0x90] sm:$0xf]  ;;  %v1009_v10 = vor.u32 %v1328_v2, %v1006_v3  ;;  %v1327_v11 = vld [vmem:[#allocation5 + $0x94] sm:$0xf0]  ;;  %v1310_v12 = vld [vmem:[#allocation5 + $0x14] sm:$0xf]  ;;  %v933_v16 = vor.u32 %v1311_v8, %v932_v7 }
  0x28   :  { %358 = vmatpush.bf16.msra.mxu3 %v1025_v50  ;;  %v934_v13 = vld [vmem:[#allocation5 + $0x18] sm:$0xf0]  ;;  %v1326_v14 = vld [vmem:[#allocation5 + $0x94] sm:$0xf]  ;;  %v924_v17 = vld [vmem:[#allocation5] sm:$0xf]  ;;  %v997_v19 = vor.u32 %v1327_v11, %v996_v9 }
  0x29   :  { %317 = vmatpush.bf16.msra.mxu0 %v949_v56  ;;  %v998_v15 = vld [vmem:[#allocation5 + $0x98] sm:$0xf0]  ;;  %v1309_v18 = vld [vmem:[#allocation5 + $0x4] sm:$0xf0]  ;;  %v937_v20 = vor.u32 %v1310_v12, %v934_v13  ;;  %v988_v21 = vld [vmem:[#allocation5 + $0x80] sm:$0xf] }
  0x2a   :  { %331 = vmatpush.bf16.msra.mxu1 %v1013_v57  ;;  %v1325_v22 = vld [vmem:[#allocation5 + $0x84] sm:$0xf0]  ;;  %v1308_v23 = vld [vmem:[#allocation5 + $0x4] sm:$0xf]  ;;  %v1001_v24 = vor.u32 %v1326_v14, %v998_v15  ;;  %v926_v25 = vld [vmem:[#allocation5 + $0x8] sm:$0xf0]  ;;  %v925_v31 = vor.u32 %v1309_v18, %v924_v17 }
  0x2b   :  { %345 = vmatpush.bf16.msra.mxu2 %v953_v58  ;;  %v1324_v26 = vld [vmem:[#allocation5 + $0x84] sm:$0xf]  ;;  %v990_v27 = vld [vmem:[#allocation5 + $0x88] sm:$0xf0]  ;;  %v916_v28 = vld [vmem:[#allocation2] sm:$0xf]  ;;  %v989_v35 = vor.u32 %v1325_v22, %v988_v21  ;;  %v929_v36 = vor.u32 %v1308_v23, %v926_v25 }
  0x2c   :  { %359 = vmatpush.bf16.msra.mxu3 %v1017_v62  ;;  %v1108_v29 = vld [vmem:[#allocation8 + $0x70] sm:$0xf]  ;;  %v1355_v30 = vld [vmem:[#allocation8 + $0x74] sm:$0xf0]  ;;  %v1354_v33 = vld [vmem:[#allocation8 + $0x74] sm:$0xf]  ;;  %v993_v39 = vor.u32 %v1324_v26, %v990_v27 }
  0x2d   :  { %318 = vmatpush.bf16.msra.mxu0 %v941_v4  ;;  %v1307_v32 = vld [vmem:[#allocation2 + $0x4] sm:$0xf0]  ;;  %v1110_v34 = vld [vmem:[#allocation8 + $0x78] sm:$0xf0]  ;;  %v1306_v37 = vld [vmem:[#allocation2 + $0x4] sm:$0xf]  ;;  %v1109_v40 = vor.u32 %v1355_v30, %v1108_v29 }
  0x2e   :  { %332 = vmatpush.bf16.msra.mxu1 %v1005_v5  ;;  %v918_v38 = vld [vmem:[#allocation2 + $0x8] sm:$0xf0]  ;;  %v1100_v41 = vld [vmem:[#allocation8 + $0x60] sm:$0xf]  ;;  %v1172_v42 = vld [vmem:[#allocation8 + $0xf0] sm:$0xf]  ;;  %v917_v44 = vor.u32 %v1307_v32, %v916_v28  ;;  %v1113_v45 = vor.u32 %v1354_v33, %v1110_v34 }
  0x2f   :  { %346 = vmatpush.bf16.msra.mxu2 %v945_v6  ;;  %v1371_v43 = vld [vmem:[#allocation8 + $0xf4] sm:$0xf0]  ;;  %v1353_v46 = vld [vmem:[#allocation8 + $0x64] sm:$0xf0]  ;;  %v1370_v47 = vld [vmem:[#allocation8 + $0xf4] sm:$0xf]  ;;  %v921_v49 = vor.u32 %v1306_v37, %v918_v38 }
  0x30   :  { %360 = vmatpush.bf16.msra.mxu3 %v1009_v10  ;;  %v1174_v48 = vld [vmem:[#allocation8 + $0xf8] sm:$0xf0]  ;;  %v1352_v50 = vld [vmem:[#allocation8 + $0x64] sm:$0xf]  ;;  %v1102_v51 = vld [vmem:[#allocation8 + $0x68] sm:$0xf0]  ;;  %v1173_v52 = vor.u32 %v1371_v43, %v1172_v42  ;;  %v1101_v53 = vor.u32 %v1353_v46, %v1100_v41 }
  0x31   :  { %319 = vmatpush.bf16.msra.mxu0 %v933_v16  ;;  %v1177_v54 = vor.u32 %v1370_v47, %v1174_v48  ;;  %v1092_v55 = vld [vmem:[#allocation8 + $0x50] sm:$0xf]  ;;  %v1164_v56 = vld [vmem:[#allocation8 + $0xe0] sm:$0xf]  ;;  %v1369_v57 = vld [vmem:[#allocation8 + $0xe4] sm:$0xf0]  ;;  %v1105_v58 = vor.u32 %v1352_v50, %v1102_v51 }
  0x32   :  { %333 = vmatpush.bf16.msra.mxu1 %v997_v19  ;;  %v1351_v59 = vld [vmem:[#allocation8 + $0x54] sm:$0xf0]  ;;  %v1368_v60 = vld [vmem:[#allocation8 + $0xe4] sm:$0xf]  ;;  %v1166_v61 = vld [vmem:[#allocation8 + $0xe8] sm:$0xf0]  ;;  %v1165_v0 = vor.u32 %v1369_v57, %v1164_v56 }
  0x33   :  { %347 = vmatpush.bf16.msra.mxu2 %v937_v20  ;;  %v1350_v62 = vld [vmem:[#allocation8 + $0x54] sm:$0xf]  ;;  %v1094_v63 = vld [vmem:[#allocation8 + $0x58] sm:$0xf0]  ;;  %v1093_v1 = vor.u32 %v1351_v59, %v1092_v55  ;;  %v1169_v2 = vor.u32 %v1368_v60, %v1166_v61  ;;  %v1084_v4 = vld [vmem:[#allocation8 + $0x40] sm:$0xf] }
  0x34   :  { %361 = vmatpush.bf16.msra.mxu3 %v1001_v24  ;;  %v1097_v3 = vor.u32 %v1350_v62, %v1094_v63  ;;  %v1349_v5 = vld [vmem:[#allocation8 + $0x44] sm:$0xf0]  ;;  %v1348_v6 = vld [vmem:[#allocation8 + $0x44] sm:$0xf]  ;;  %v1086_v7 = vld [vmem:[#allocation8 + $0x48] sm:$0xf0] }
  0x35   :  { %320 = vmatpush.bf16.msra.mxu0 %v925_v31  ;;  %v1085_v8 = vor.u32 %v1349_v5, %v1084_v4  ;;  %v1089_v9 = vor.u32 %v1348_v6, %v1086_v7  ;;  %v1156_v10 = vld [vmem:[#allocation8 + $0xd0] sm:$0xf]  ;;  %v1367_v11 = vld [vmem:[#allocation8 + $0xd4] sm:$0xf0]  ;;  %v1366_v12 = vld [vmem:[#allocation8 + $0xd4] sm:$0xf] }
  0x36   :  { %334 = vmatpush.bf16.msra.mxu1 %v989_v35  ;;  %v1157_v13 = vor.u32 %v1367_v11, %v1156_v10  ;;  %v1158_v14 = vld [vmem:[#allocation8 + $0xd8] sm:$0xf0]  ;;  %v1076_v16 = vld [vmem:[#allocation8 + $0x30] sm:$0xf]  ;;  %v1347_v17 = vld [vmem:[#allocation8 + $0x34] sm:$0xf0] }
  0x37   :  { %348 = vmatpush.bf16.msra.mxu2 %v929_v36  ;;  %v1161_v15 = vor.u32 %v1366_v12, %v1158_v14  ;;  %v1346_v18 = vld [vmem:[#allocation8 + $0x34] sm:$0xf]  ;;  %v1077_v19 = vor.u32 %v1347_v17, %v1076_v16  ;;  %v1078_v20 = vld [vmem:[#allocation8 + $0x38] sm:$0xf0]  ;;  %v1148_v22 = vld [vmem:[#allocation8 + $0xc0] sm:$0xf] }
  0x38   :  { %362 = vmatpush.bf16.msra.mxu3 %v993_v39  ;;  %321 = vmatmul.bf16.vlgmr.msra.gmra.mxu0 %v917_v44  ;;  %v1081_v21 = vor.u32 %v1346_v18, %v1078_v20  ;;  %v1365_v23 = vld [vmem:[#allocation8 + $0xc4] sm:$0xf0]  ;;  %v1364_v24 = vld [vmem:[#allocation8 + $0xc4] sm:$0xf]  ;;  %v1150_v26 = vld [vmem:[#allocation8 + $0xc8] sm:$0xf0] }
  0x39   :  { %573 = vmatpush.bf16.msrb.mxu0 %v1109_v40  ;;  %335 = vmatmul.bf16.vlgmr.msra.gmra.mxu1 %v921_v49  ;;  %v1149_v25 = vor.u32 %v1365_v23, %v1148_v22  ;;  %v1153_v27 = vor.u32 %v1364_v24, %v1150_v26  ;;  %v1068_v28 = vld [vmem:[#allocation8 + $0x20] sm:$0xf]  ;;  %v1345_v29 = vld [vmem:[#allocation8 + $0x24] sm:$0xf0]  ;;  %v1344_v31 = vld [vmem:[#allocation8 + $0x24] sm:$0xf] }
  0x3a   :  { %349 = vmatmul.bf16.vlgmr.msra.gmra.mxu2 %v917_v44  ;;  %587 = vmatpush.bf16.msrb.mxu1 %v1173_v52  ;;  %v1069_v30 = vor.u32 %v1345_v29, %v1068_v28  ;;  %v1070_v32 = vld [vmem:[#allocation8 + $0x28] sm:$0xf0]  ;;  %v1140_v34 = vld [vmem:[#allocation8 + $0xb0] sm:$0xf]  ;;  %v1363_v35 = vld [vmem:[#allocation8 + $0xb4] sm:$0xf0] }
  0x3b   :  { %601 = vmatpush.bf16.msrb.mxu2 %v1113_v45  ;;  %363 = vmatmul.bf16.vlgmr.msra.gmra.mxu3 %v921_v49  ;;  %v1073_v33 = vor.u32 %v1344_v31, %v1070_v32  ;;  %v1362_v36 = vld [vmem:[#allocation8 + $0xb4] sm:$0xf]  ;;  %v1141_v37 = vor.u32 %v1363_v35, %v1140_v34  ;;  %v1142_v38 = vld [vmem:[#allocation8 + $0xb8] sm:$0xf0]  ;;  %v1060_v40 = vld [vmem:[#allocation8 + $0x10] sm:$0xf] }
  0x3c   :  { %615 = vmatpush.bf16.msrb.mxu3 %v1177_v54  ;;  %v1145_v39 = vor.u32 %v1362_v36, %v1142_v38  ;;  %v1343_v41 = vld [vmem:[#allocation8 + $0x14] sm:$0xf0]  ;;  %v1342_v42 = vld [vmem:[#allocation8 + $0x14] sm:$0xf]  ;;  %v1062_v44 = vld [vmem:[#allocation8 + $0x18] sm:$0xf0] }
  0x3d   :  { %574 = vmatpush.bf16.msrb.mxu0 %v1101_v53  ;;  %v1061_v43 = vor.u32 %v1343_v41, %v1060_v40  ;;  %v1065_v45 = vor.u32 %v1342_v42, %v1062_v44  ;;  %v1132_v46 = vld [vmem:[#allocation8 + $0xa0] sm:$0xf]  ;;  %v1361_v47 = vld [vmem:[#allocation8 + $0xa4] sm:$0xf0]  ;;  %v1360_v48 = vld [vmem:[#allocation8 + $0xa4] sm:$0xf] }
  0x3e   :  { %588 = vmatpush.bf16.msrb.mxu1 %v1165_v0  ;;  %v1133_v49 = vor.u32 %v1361_v47, %v1132_v46  ;;  %v1134_v50 = vld [vmem:[#allocation8 + $0xa8] sm:$0xf0]  ;;  %v1052_v52 = vld [vmem:[#allocation8] sm:$0xf]  ;;  %v1341_v53 = vld [vmem:[#allocation8 + $0x4] sm:$0xf0] }
  0x3f   :  { %602 = vmatpush.bf16.msrb.mxu2 %v1105_v58  ;;  %v1137_v51 = vor.u32 %v1360_v48, %v1134_v50  ;;  %v1340_v54 = vld [vmem:[#allocation8 + $0x4] sm:$0xf]  ;;  %v1053_v55 = vor.u32 %v1341_v53, %v1052_v52  ;;  %v1054_v56 = vld [vmem:[#allocation8 + $0x8] sm:$0xf0]  ;;  %v1124_v58 = vld [vmem:[#allocation8 + $0x90] sm:$0xf] }
  0x40   :  { %616 = vmatpush.bf16.msrb.mxu3 %v1169_v2  ;;  %v1057_v57 = vor.u32 %v1340_v54, %v1054_v56  ;;  %v1359_v59 = vld [vmem:[#allocation8 + $0x94] sm:$0xf0]  ;;  %v1358_v60 = vld [vmem:[#allocation8 + $0x94] sm:$0xf]  ;;  %v1126_v62 = vld [vmem:[#allocation8 + $0x98] sm:$0xf0] }
  0x41   :  { %575 = vmatpush.bf16.msrb.mxu0 %v1093_v1  ;;  %v1125_v61 = vor.u32 %v1359_v59, %v1124_v58  ;;  %v1129_v63 = vor.u32 %v1358_v60, %v1126_v62  ;;  %v1116_v0 = vld [vmem:[#allocation8 + $0x80] sm:$0xf]  ;;  %v1357_v1 = vld [vmem:[#allocation8 + $0x84] sm:$0xf0]  ;;  %v1356_v2 = vld [vmem:[#allocation8 + $0x84] sm:$0xf] }
  0x42   :  { %589 = vmatpush.bf16.msrb.mxu1 %v1157_v13  ;;  %v1118_v4 = vld [vmem:[#allocation8 + $0x88] sm:$0xf0]  ;;  %v1236_v6 = vld [vmem:[#allocation10 + $0x70] sm:$0xf]  ;;  %v1387_v7 = vld [vmem:[#allocation10 + $0x74] sm:$0xf0] }
  0x43   :  { %603 = vmatpush.bf16.msrb.mxu2 %v1097_v3  ;;  %v1117_v3 = vor.u32 %v1357_v1, %v1116_v0  ;;  %v1121_v5 = vor.u32 %v1356_v2, %v1118_v4  ;;  %v1238_v10 = vld [vmem:[#allocation10 + $0x78] sm:$0xf0]  ;;  %v1228_v11 = vld [vmem:[#allocation10 + $0x60] sm:$0xf]  ;;  %v1385_v12 = vld [vmem:[#allocation10 + $0x64] sm:$0xf0] }
  0x44   :  { %617 = vmatpush.bf16.msrb.mxu3 %v1161_v15  ;;  %v1384_v14 = vld [vmem:[#allocation10 + $0x64] sm:$0xf]  ;;  %v1230_v15 = vld [vmem:[#allocation10 + $0x68] sm:$0xf0]  ;;  %v1300_v16 = vld [vmem:[#allocation10 + $0xf0] sm:$0xf]  ;;  %v1229_v17 = vor.u32 %v1385_v12, %v1228_v11 }
  0x45   :  { %576 = vmatpush.bf16.msrb.mxu0 %v1085_v8  ;;  %v1386_v8 = vld [vmem:[#allocation10 + $0x74] sm:$0xf]  ;;  %v1403_v18 = vld [vmem:[#allocation10 + $0xf4] sm:$0xf0]  ;;  %v1302_v20 = vld [vmem:[#allocation10 + $0xf8] sm:$0xf0] }
  0x46   :  { %590 = vmatpush.bf16.msrb.mxu1 %v1149_v25  ;;  %v1241_v13 = vor.u32 %v1386_v8, %v1238_v10  ;;  %v1301_v22 = vor.u32 %v1403_v18, %v1300_v16  ;;  %v1220_v24 = vld [vmem:[#allocation10 + $0x50] sm:$0xf]  ;;  %v1383_v25 = vld [vmem:[#allocation10 + $0x54] sm:$0xf0]  ;;  %v1382_v26 = vld [vmem:[#allocation10 + $0x54] sm:$0xf] }
  0x47   :  { %604 = vmatpush.bf16.msrb.mxu2 %v1089_v9  ;;  %v1237_v9 = vor.u32 %v1387_v7, %v1236_v6  ;;  %v137_v28 = vld [vmem:[#allocation7] sm:$0x3]  ;;  %v1221_v29 = vor.u32 %v1383_v25, %v1220_v24  ;;  %v1401_v56 = vld [vmem:[#allocation10 + $0xe4] sm:$0xf0]  ;;  %v1294_v59 = vld [vmem:[#allocation10 + $0xe8] sm:$0xf0] }
  0x48   :  { %618 = vmatpush.bf16.msrb.mxu3 %v1153_v27  ;;  %v1222_v27 = vld [vmem:[#allocation10 + $0x58] sm:$0xf0]  ;;  %v139_v32 = vperm.slane %v137_v28, 0  ;;  %v140_v36 = vperm.slane %v137_v28, 1  ;;  %v1381_v62 = vld [vmem:[#allocation10 + $0x44] sm:$0xf0] }
  0x49   :  { %577 = vmatpush.bf16.msrb.mxu0 %v1077_v19  ;;  %v1402_v19 = vld [vmem:[#allocation10 + $0xf4] sm:$0xf]  ;;  %v1225_v31 = vor.u32 %v1382_v26, %v1222_v27  ;;  %v1214_v1 = vld [vmem:[#allocation10 + $0x48] sm:$0xf0]  ;;  %v1284_v2 = vld [vmem:[#allocation10 + $0xd0] sm:$0xf] }
  0x4a   :  { %591 = vmatpush.bf16.msrb.mxu1 %v1141_v37  ;;  %v1305_v23 = vor.u32 %v1402_v19, %v1302_v20  ;;  %v1398_v6 = vld [vmem:[#allocation10 + $0xd4] sm:$0xf]  ;;  %v1286_v7 = vld [vmem:[#allocation10 + $0xd8] sm:$0xf0]  ;;  %v1379_v10 = vld [vmem:[#allocation10 + $0x34] sm:$0xf0] }
  0x4b   :  { %605 = vmatpush.bf16.msrb.mxu2 %v1081_v21  ;;  %v1233_v21 = vor.u32 %v1384_v14, %v1230_v15  ;;  %v1289_v8 = vor.u32 %v1398_v6, %v1286_v7  ;;  %v1378_v11 = vld [vmem:[#allocation10 + $0x34] sm:$0xf]  ;;  %v1276_v15 = vld [vmem:[#allocation10 + $0xc0] sm:$0xf]  ;;  %v1397_v16 = vld [vmem:[#allocation10 + $0xc4] sm:$0xf0] }
  0x4c   :  { %619 = vmatpush.bf16.msrb.mxu3 %v1145_v39  ;;  %v1396_v18 = vld [vmem:[#allocation10 + $0xc4] sm:$0xf]  ;;  %v1278_v19 = vld [vmem:[#allocation10 + $0xc8] sm:$0xf0]  ;;  %v1268_v27 = vld [vmem:[#allocation10 + $0xb0] sm:$0xf] }
  0x4d   :  { %578 = vmatpush.bf16.msrb.mxu0 %v1069_v30  ;;  %v1281_v20 = vor.u32 %v1396_v18, %v1278_v19  ;;  %v1198_v25 = vld [vmem:[#allocation10 + $0x28] sm:$0xf0]  ;;  %v1395_v28 = vld [vmem:[#allocation10 + $0xb4] sm:$0xf0]  ;;  %s1571_s26 = smov [#allocation11]   ;;  %s899_s29 = sshll.u32 %s1658_s7, 4  ;;  %s900_s29 = int_to_ptr.hbm [resolvable:$true] %s899_s29 }
  0x4e   :  { %592 = vmatpush.bf16.msrb.mxu1 %v1133_v49 }
  0x4f   :  { %606 = vmatpush.bf16.msrb.mxu2 %v1073_v33 }
  0x50   :  { %620 = vmatpush.bf16.msrb.mxu3 %v1137_v51 }
  0x51   :  { %579 = vmatpush.bf16.msrb.mxu0 %v1061_v43 }
  0x52   :  { %593 = vmatpush.bf16.msrb.mxu1 %v1125_v61  ;;  %v1212_v61 = vld [vmem:[#allocation10 + $0x40] sm:$0xf] }
  0x53   :  { %607 = vmatpush.bf16.msrb.mxu2 %v1065_v45  ;;  %v1213_v0 = vor.u32 %v1381_v62, %v1212_v61  ;;  %v1246_v61 = vld [vmem:[#allocation10 + $0x88] sm:$0xf0] }
  0x54   :  { %621 = vmatpush.bf16.msrb.mxu3 %v1129_v63  ;;  %v1380_v63 = vld [vmem:[#allocation10 + $0x44] sm:$0xf] }
  0x55   :  { %580 = vmatpush.bf16.msrb.mxu0 %v1053_v55  ;;  %v1292_v55 = vld [vmem:[#allocation10 + $0xe0] sm:$0xf]  ;;  %v1217_v4 = vor.u32 %v1380_v63, %v1214_v1 }
  0x56   :  { %594 = vmatpush.bf16.msrb.mxu1 %v1117_v3  ;;  %v1293_v58 = vor.u32 %v1401_v56, %v1292_v55  ;;  %v1399_v3 = vld [vmem:[#allocation10 + $0xd4] sm:$0xf0]  ;;  %v1254_v55 = vld [vmem:[#allocation10 + $0x98] sm:$0xf0] }
  0x57   :  { %608 = vmatpush.bf16.msrb.mxu2 %v1057_v57  ;;  %v1400_v57 = vld [vmem:[#allocation10 + $0xe4] sm:$0xf] }
  0x58   :  { %622 = vmatpush.bf16.msrb.mxu3 %v1121_v5  ;;  %v1297_v60 = vor.u32 %v1400_v57, %v1294_v59  ;;  %v1285_v5 = vor.u32 %v1399_v3, %v1284_v2  ;;  %v1244_v57 = vld [vmem:[#allocation10 + $0x80] sm:$0xf]  ;;  %v1388_v59 = vld [vmem:[#allocation10 + $0x84] sm:$0xf] }
  0x59   :  { %833 = vmatpush.bf16.msra.mxu0 %v1237_v9  ;;  %v1204_v9 = vld [vmem:[#allocation10 + $0x30] sm:$0xf]  ;;  %v1249_v62 = vor.u32 %v1388_v59, %v1246_v61 }
  0x5a   :  { %847 = vmatpush.bf16.msra.mxu1 %v1301_v22  ;;  %v1205_v12 = vor.u32 %v1379_v10, %v1204_v9  ;;  %v1377_v22 = vld [vmem:[#allocation10 + $0x24] sm:$0xf0] }
  0x5b   :  { %861 = vmatpush.bf16.msra.mxu2 %v1241_v13  ;;  %v1206_v13 = vld [vmem:[#allocation10 + $0x38] sm:$0xf0] }
  0x5c   :  { %875 = vmatpush.bf16.msra.mxu3 %v1305_v23  ;;  %v1209_v14 = vor.u32 %v1378_v11, %v1206_v13  ;;  %v1376_v23 = vld [vmem:[#allocation10 + $0x24] sm:$0xf] }
  0x5d   :  { %834 = vmatpush.bf16.msra.mxu0 %v1229_v17  ;;  %v1277_v17 = vor.u32 %v1397_v16, %v1276_v15  ;;  %v1201_v26 = vor.u32 %v1376_v23, %v1198_v25 }
  0x5e   :  { %848 = vmatpush.bf16.msra.mxu1 %v1293_v58  ;;  %v1389_v58 = vld [vmem:[#allocation10 + $0x84] sm:$0xf0] }
  0x5f   :  { %862 = vmatpush.bf16.msra.mxu2 %v1233_v21  ;;  %v1196_v21 = vld [vmem:[#allocation10 + $0x20] sm:$0xf] }
  0x60   :  { %876 = vmatpush.bf16.msra.mxu3 %v1297_v60  ;;  %v1197_v24 = vor.u32 %v1377_v22, %v1196_v21  ;;  %v1245_v60 = vor.u32 %v1389_v58, %v1244_v57 }
  0x61   :  { %835 = vmatpush.bf16.msra.mxu0 %v1221_v29  ;;  %v1394_v29 = vld [vmem:[#allocation10 + $0xb4] sm:$0xf] }
  0x62   :  { %849 = vmatpush.bf16.msra.mxu1 %v1285_v5 }
  0x63   :  { %863 = vmatpush.bf16.msra.mxu2 %v1225_v31  ;;  %v1270_v31 = vld [vmem:[#allocation10 + $0xb8] sm:$0xf0] }
  0x64   :  { %877 = vmatpush.bf16.msra.mxu3 %v1289_v8 }
  0x65   :  { %836 = vmatpush.bf16.msra.mxu0 %v1213_v0  ;;  %v407_v0 = vld [vmem:[%s1655_s4] sm:$0x3] }
  0x66   :  { %850 = vmatpush.bf16.msra.mxu1 %v1277_v17  ;;  %v409_v3 = vperm.slane %v407_v0, 0  ;;  %v410_v8 = vperm.slane %v407_v0, 1 }
  0x67   :  { %864 = vmatpush.bf16.msra.mxu2 %v1217_v4 }
  0x68   :  { %878 = vmatpush.bf16.msra.mxu3 %v1281_v20 }
  0x69   :  { %837 = vmatpush.bf16.msra.mxu0 %v1205_v12 }
  0x6b   :  { %865 = vmatpush.bf16.msra.mxu2 %v1209_v14 }
  0x6d   :  { %838 = vmatpush.bf16.msra.mxu0 %v1197_v24  ;;  %v667_v24 = vld [vmem:[%s1657_s6] sm:$0x3]  ;;  %s897_s6 = sshll.u32 %s1571_s26, 4  ;;  %s898_s6 = int_to_ptr.vmem [resolvable:$true] %s897_s6 }
  0x6f   :  { %866 = vmatpush.bf16.msra.mxu2 %v1201_v26 }
  0xb5   :  { %v322_v30 = vpop.f32.mrf.mxu0 }
  0xb6   :  { %v336_v33 = vpop.f32.mrf.mxu1  ;;  %v323_v34 = vadd.f32 %v322_v30, %v139_v32  ;;  %v1269_v30 = vor.u32 %v1395_v28, %v1268_v27  ;;  %v669_v27 = vperm.slane %v667_v24, 0  ;;  %v670_v28 = vperm.slane %v667_v24, 1 }
  0xb8   :  { %v337_v39 = vadd.f32 %v336_v33, %v323_v34  ;;  %v1188_v33 = vld [vmem:[#allocation10 + $0x10] sm:$0xf]  ;;  %v1375_v34 = vld [vmem:[#allocation10 + $0x14] sm:$0xf0]  ;;  %851 = vmatpush.bf16.msra.mxu1 %v1269_v30 }
  0xba   :  { %v369_v44 = vmax.f32 %v337_v39, 0.0  ;;  %v1260_v39 = vld [vmem:[#allocation10 + $0xa0] sm:$0xf] }
  0xbd   :  { %v350_v35 = vpop.f32.mrf.mxu2  ;;  %v324_v38 = vpop.f32.mrf.mxu0 }
  0xbe   :  { %v364_v37 = vpop.f32.mrf.mxu3  ;;  %v325_v40 = vadd.f32 %v324_v38, %v139_v32  ;;  %v338_v41 = vpop.f32.mrf.mxu1  ;;  %v351_v43 = vadd.f32 %v350_v35, %v140_v36  ;;  %v1273_v32 = vor.u32 %v1394_v29, %v1270_v31  ;;  %v1374_v35 = vld [vmem:[#allocation10 + $0x14] sm:$0xf] }
  0xc0   :  { %v339_v42 = vadd.f32 %v338_v41, %v325_v40  ;;  %v365_v48 = vadd.f32 %v364_v37, %v351_v43  ;;  %v1190_v37 = vld [vmem:[#allocation10 + $0x18] sm:$0xf0]  ;;  %879 = vmatpush.bf16.msra.mxu3 %v1273_v32  ;;  %v1393_v40 = vld [vmem:[#allocation10 + $0xa4] sm:$0xf0]  ;;  %v1392_v41 = vld [vmem:[#allocation10 + $0xa4] sm:$0xf] }
  0xc1   :  { %v1193_v38 = vor.u32 %v1374_v35, %v1190_v37  ;;  %v1262_v43 = vld [vmem:[#allocation10 + $0xa8] sm:$0xf0] }
  0xc2   :  { %v371_v45 = vmax.f32 %v339_v42, 0.0  ;;  %v370_v52 = vmax.f32 %v365_v48, 0.0  ;;  %v1261_v42 = vor.u32 %v1393_v40, %v1260_v39 }
  0xc3   :  { %867 = vmatpush.bf16.msra.mxu2 %v1193_v38 }
  0xc4   :  { %v373_v46 = vpack.c.bf16 %v371_v45, %v369_v44  ;;  %v1265_v44 = vor.u32 %v1392_v41, %v1262_v43  ;;  %v1180_v45 = vld [vmem:[#allocation10] sm:$0xf]  ;;  %852 = vmatpush.bf16.msra.mxu1 %v1261_v42 }
  0xc5   :  { %v352_v47 = vpop.f32.mrf.mxu2 }
  0xc6   :  { %v353_v49 = vadd.f32 %v352_v47, %v140_v36  ;;  %v366_v50 = vpop.f32.mrf.mxu3  ;;  %581 = vmatmul.bf16.vlgmr.msrb.gmra.mxu0 %v373_v46  ;;  %609 = vmatmul.bf16.vlgmr.msrb.gmra.mxu2 %v373_v46  ;;  %v1189_v36 = vor.u32 %v1375_v34, %v1188_v33  ;;  %v1373_v46 = vld [vmem:[#allocation10 + $0x4] sm:$0xf0]  ;;  %v1372_v47 = vld [vmem:[#allocation10 + $0x4] sm:$0xf] }
  0xc7   :  { %v1181_v48 = vor.u32 %v1373_v46, %v1180_v45  ;;  %880 = vmatpush.bf16.msra.mxu3 %v1265_v44 }
  0xc8   :  { %v367_v51 = vadd.f32 %v366_v50, %v353_v49  ;;  %839 = vmatpush.bf16.msra.mxu0 %v1189_v36  ;;  %v1182_v49 = vld [vmem:[#allocation10 + $0x8] sm:$0xf0] }
  0xc9   :  { %v1185_v50 = vor.u32 %v1372_v47, %v1182_v49 }
  0xca   :  { %v372_v53 = vmax.f32 %v367_v51, 0.0  ;;  %v1252_v51 = vld [vmem:[#allocation10 + $0x90] sm:$0xf] }
  0xcb   :  { %868 = vmatpush.bf16.msra.mxu2 %v1185_v50 }
  0xcc   :  { %v374_v54 = vpack.c.bf16 %v372_v53, %v370_v52  ;;  %v1391_v52 = vld [vmem:[#allocation10 + $0x94] sm:$0xf0]  ;;  %v1390_v53 = vld [vmem:[#allocation10 + $0x94] sm:$0xf]  ;;  %840 = vmatpush.bf16.msra.mxu0 %v1181_v48 }
  0xcd   :  { %v1257_v56 = vor.u32 %v1390_v53, %v1254_v55 }
  0xce   :  { %595 = vmatmul.bf16.vlgmr.msrb.gmra.mxu1 %v374_v54  ;;  %623 = vmatmul.bf16.vlgmr.msrb.gmra.mxu3 %v374_v54  ;;  %v1253_v54 = vor.u32 %v1391_v52, %v1252_v51 }
  0xcf   :  { %881 = vmatpush.bf16.msra.mxu3 %v1257_v56 }
  0xd0   :  { %853 = vmatpush.bf16.msra.mxu1 %v1253_v54 }
  0xd3   :  { %882 = vmatpush.bf16.msra.mxu3 %v1249_v62 }
  0xd4   :  { %854 = vmatpush.bf16.msra.mxu1 %v1245_v60 }
 0x143   :  { %v582_v63 = vpop.f32.mrf.mxu0 }
 0x144   :  { %v583_v5 = vadd.f32 %v582_v63, %v409_v3 }
 0x149   :  { %v610_v2 = vpop.f32.mrf.mxu2 }
 0x14a   :  { %v611_v14 = vadd.f32 %v610_v2, %v410_v8 }
 0x14b   :  { %v596_v1 = vpop.f32.mrf.mxu1  ;;  %v584_v4 = vpop.f32.mrf.mxu0 }
 0x14c   :  { %v597_v7 = vadd.f32 %v596_v1, %v583_v5  ;;  %v585_v9 = vadd.f32 %v584_v4, %v409_v3 }
 0x14e   :  { %v629_v13 = vmax.f32 %v597_v7, 0.0 }
 0x151   :  { %v624_v6 = vpop.f32.mrf.mxu3  ;;  %v612_v12 = vpop.f32.mrf.mxu2 }
 0x152   :  { %v625_v16 = vadd.f32 %v624_v6, %v611_v14  ;;  %v613_v18 = vadd.f32 %v612_v12, %v410_v8 }
 0x153   :  { %v598_v10 = vpop.f32.mrf.mxu1 }
 0x154   :  { %v599_v11 = vadd.f32 %v598_v10, %v585_v9  ;;  %v630_v21 = vmax.f32 %v625_v16, 0.0 }
 0x156   :  { %v631_v15 = vmax.f32 %v599_v11, 0.0 }
 0x158   :  { %v633_v17 = vpack.c.bf16 %v631_v15, %v629_v13 }
 0x159   :  { %v626_v19 = vpop.f32.mrf.mxu3 }
 0x15a   :  { %v627_v20 = vadd.f32 %v626_v19, %v613_v18  ;;  %841 = vmatmul.bf16.vlgmr.msra.gmra.mxu0 %v633_v17  ;;  %869 = vmatmul.bf16.vlgmr.msra.gmra.mxu2 %v633_v17 }
 0x15c   :  { %v632_v22 = vmax.f32 %v627_v20, 0.0 }
 0x15e   :  { %v634_v23 = vpack.c.bf16 %v632_v22, %v630_v21 }
 0x160   :  { %855 = vmatmul.bf16.vlgmr.msra.gmra.mxu1 %v634_v23  ;;  %883 = vmatmul.bf16.vlgmr.msra.gmra.mxu3 %v634_v23 }
 0x1d7   :  { %v842_v25 = vpop.f32.mrf.mxu0 }
 0x1d8   :  { %v843_v30 = vadd.f32 %v842_v25, %v669_v27 }
 0x1dd   :  { %v870_v26 = vpop.f32.mrf.mxu2  ;;  %v856_v29 = vpop.f32.mrf.mxu1 }
 0x1de   :  { %v871_v31 = vadd.f32 %v870_v26, %v670_v28  ;;  %v857_v33 = vadd.f32 %v856_v29, %v843_v30 }
 0x1df   :  { %v844_v36 = vpop.f32.mrf.mxu0 }
 0x1e0   :  { %v845_v39 = vadd.f32 %v844_v36, %v669_v27 }
 0x1e3   :  { %v884_v32 = vpop.f32.mrf.mxu3 }
 0x1e4   :  { %v885_v34 = vadd.f32 %v884_v32, %v871_v31 }
 0x1e5   :  { %v872_v37 = vpop.f32.mrf.mxu2  ;;  %v858_v38 = vpop.f32.mrf.mxu1 }
 0x1e6   :  { %v889_v35 = vpack.c.bf16 %v885_v34, %v857_v33  ;;  %v873_v40 = vadd.f32 %v872_v37, %v670_v28  ;;  %v859_v42 = vadd.f32 %v858_v38, %v845_v39 }
 0x1e8   :  { %891 = vst [vmem:[#allocation11] sm:$0xff] %v889_v35 }
 0x1eb   :  { %v886_v41 = vpop.f32.mrf.mxu3 }
 0x1ec   :  { %v887_v43 = vadd.f32 %v886_v41, %v873_v40 }
 0x1ee   :  { %v890_v44 = vpack.c.bf16 %v887_v43, %v859_v42 }
 0x1f0   :  { %892 = vst [vmem:[#allocation11 + $0x8] sm:$0xff] %v890_v44 }
 0x1f1   :  { %905 = dma.vmem_to_hbm [thread:$0]  %s898_s6, 256, %s900_s29, [#allocation4], %s1565_s9, %s1565_s9, %s1566_s10  }
 0x1f2   :  { %1562 = dma.done.wait [#allocation4], 256  }
 0x1f3   :  { %1563 = vsyncadd [#allocation4], 4294967040 }
 0x1f4   :  { %910 = vsyncpa [#allocation3], 1 }
 0x1f5   :  { %911 = vsyncpa [#allocation6], 1 }
 0x1f6   :  { %912 = vsyncpa [#allocation9], 1 }
 0x1f7   :  { %913 = vsyncpa [#allocation4], 1 }

</bundles_post_ra>
